<compile_context>
chip_gen: v6e
topology: v6e:2x2x1
jax: 0.10.0
libtpu: 0.0.40
codegen_flags: <defaults>
</compile_context>

<pallas_src>
import functools
import math

import numpy as np
import jax
import jax.numpy as jnp
from jax.experimental import pallas as pl
from jax.experimental.pallas import tpu as pltpu

# ----------------------------------------------------------------------------------
# Model constants (match NeRFMLP defaults used by PixelNeRF)
# ----------------------------------------------------------------------------------
MIN_DEG_POINT = 0
MAX_DEG_POINT = 10
DEG_VIEW = 4
NETWIDTH = 128
LATENT_SIZE = 512                      # resnet34, 4 layers -> 64+64+128+256 = 512
POS_ENC_DIM = ((MAX_DEG_POINT - MIN_DEG_POINT) * 2 + 1) * 3   # 63
VIEW_ENC_DIM = (DEG_VIEW * 2 + 1) * 3                          # 27
HEAD_DIM = 8                           # packed head lanes: 0:3 raw rgb, 3 raw sigma


def _round_up(x, m):
    return ((x + m - 1) // m) * m


# ----------------------------------------------------------------------------------
# Pallas kernel 1: NeRF MLP (pts linears + bottleneck + density + view branch + rgb)
# ----------------------------------------------------------------------------------
def _nerf_mlp_kernel(pos_ref, lat_ref, vdir_ref,
                     w0p_ref, w0l_ref, wv0b_ref, wv0v_ref,
                     wstack_ref, whead_ref, bstack_ref, out_ref):
    nv = pos_ref.shape[0]
    tp = pos_ref.shape[1]
    inv_nv = 1.0 / nv

    def dot(a, w):
        # bf16 operands, f32 accumulation on the MXU
        return jnp.dot(a, w, preferred_element_type=jnp.float32)

    def act(x):
        # bias-add + ReLU stay f32 (v5e VPU has no bf16); feed the next MXU op bf16
        return jnp.maximum(x, 0.0).astype(jnp.bfloat16)

    def flat(ref):
        # fold the (small, static) source-view axis into the matmul M axis;
        # tp is a multiple of 8 so this leading-dim collapse is layout preserving.
        x = ref[...]
        return x.reshape(nv * tp, x.shape[-1])

    def combine(x):
        # combine_interleaved(..., "average") over the folded view groups (f32 accum)
        acc = x[0:tp].astype(jnp.float32)
        for v in range(1, nv):
            acc = acc + x[v * tp:(v + 1) * tp].astype(jnp.float32)
        return acc * inv_nv

    b = bstack_ref[...]                      # (8, 128) f32 bias slab

    pos = flat(pos_ref)                      # (nv*tp, 63)  bf16
    lat = flat(lat_ref)                      # (nv*tp, 512) bf16
    vdir = flat(vdir_ref)                    # (nv*tp, 27)  bf16

    # pts_linears[0] on cat([pos_enc, latent]) == split matmul
    h = act(dot(pos, w0p_ref[...]) + dot(lat, w0l_ref[...]) + b[0:1])
    h = act(dot(h, wstack_ref[0]) + b[1:2])
    h = act(dot(h, wstack_ref[1]) + b[2:3])
    h = act(dot(h, wstack_ref[2]) + b[3:4])

    # bottleneck (no activation) + views_linear[0] on pre-combine rows (split matmul)
    bneck = (dot(h, wstack_ref[3]) + b[4:5]).astype(jnp.bfloat16)
    hv = dot(bneck, wv0b_ref[...]) + dot(vdir, wv0v_ref[...]) + b[5:6]

    hv = act(combine(hv))                                # combine over views, then ReLU
    hv = act(dot(hv, wstack_ref[4]) + b[6:7])            # views_linear[1]

    h_avg = combine(h).astype(jnp.bfloat16)              # density-branch input (tp, 128)

    # fused K=256 head matmul; packed lanes: 0:3 raw rgb (from hv), 3 raw sigma (from h_avg)
    head_in = jnp.concatenate([h_avg, hv], axis=-1)      # (tp, 256) bf16
    out_ref[...] = dot(head_in, whead_ref[...]) + b[7:8, 0:HEAD_DIM]


def nerf_mlp_pallas(packed, samples_enc, cond_tile, latent, tile_points=1024):
    # tile_points=1024 keeps double-buffered VMEM ~10 MB at NV=2 (fits v5e/v6e/v7x);
    # sweep 512-2048 per generation if points are plentiful.
    NV, Np, _ = samples_enc.shape
    tp = min(tile_points, _round_up(Np, 8))
    np_pad = _round_up(Np, tp)

    def prep(x):
        x = x.astype(jnp.bfloat16)
        if np_pad != Np:
            x = jnp.pad(x, ((0, 0), (0, np_pad - Np), (0, 0)))
        return x

    pos = prep(samples_enc)      # (NV, np_pad, 63)
    lat = prep(latent)           # (NV, np_pad, 512)
    vdir = prep(cond_tile)       # (NV, np_pad, 27)

    in_specs = [
        pl.BlockSpec((NV, tp, POS_ENC_DIM), lambda i: (0, i, 0)),
        pl.BlockSpec((NV, tp, LATENT_SIZE), lambda i: (0, i, 0)),
        pl.BlockSpec((NV, tp, VIEW_ENC_DIM), lambda i: (0, i, 0)),
        pl.BlockSpec((POS_ENC_DIM, NETWIDTH), lambda i: (0, 0)),
        pl.BlockSpec((LATENT_SIZE, NETWIDTH), lambda i: (0, 0)),
        pl.BlockSpec((NETWIDTH, NETWIDTH), lambda i: (0, 0)),
        pl.BlockSpec((VIEW_ENC_DIM, NETWIDTH), lambda i: (0, 0)),
        pl.BlockSpec((5, NETWIDTH, NETWIDTH), lambda i: (0, 0, 0)),
        pl.BlockSpec((2 * NETWIDTH, HEAD_DIM), lambda i: (0, 0)),
        pl.BlockSpec((8, NETWIDTH), lambda i: (0, 0)),
    ]

    out = pl.pallas_call(
        _nerf_mlp_kernel,
        grid=(np_pad // tp,),
        in_specs=in_specs,
        out_specs=pl.BlockSpec((tp, HEAD_DIM), lambda i: (i, 0)),
        out_shape=jax.ShapeDtypeStruct((np_pad, HEAD_DIM), jnp.float32),
        compiler_params=pltpu.CompilerParams(
            dimension_semantics=("parallel",),
            vmem_limit_bytes=48 * 1024 * 1024),
    )(pos, lat, vdir,
      packed['w0p'], packed['w0l'], packed['wv0b'], packed['wv0v'],
      packed['w_stack'], packed['w_head'], packed['b_stack'])

    raw_rgb = out[:Np, 0:3]
    raw_sigma = out[:Np, 3:4]
    return raw_rgb, raw_sigma


# ----------------------------------------------------------------------------------
# Pallas kernel 2: activations + volumetric rendering (cumprod via triangular matmul)
# ----------------------------------------------------------------------------------
def _render_kernel(rgb_ref, sigma_ref, t_ref, dirs_ref, tri_ref,
                   weights_ref, misc_ref, *, white_bkgd):
    eps = 1e-10
    raw_rgb = rgb_ref[...]                                  # (TB, Ns, 3)
    rgb = pl.reciprocal(1.0 + jnp.exp(-raw_rgb), approx=True)   # sigmoid via EUP
    sigma = jnp.maximum(sigma_ref[...], 0.0)                # relu, (TB, Ns)
    t = t_ref[...]                                          # (TB, Ns)
    dirs = dirs_ref[...]                                    # (TB, 3)

    # dists[:, j] = t[:, j+1] - t[:, j], last = 1e10 (shifted subtract)
    dists = jnp.concatenate(
        [t[:, 1:] - t[:, :-1], jnp.full_like(t[:, :1], 1e10)], axis=-1)
    dnorm = jnp.sqrt(jnp.sum(dirs * dirs, axis=-1, keepdims=True))   # (TB, 1)
    dists = dists * dnorm

    alpha = 1.0 - jnp.exp(-sigma * dists)
    # exclusive cumprod(1 - alpha + eps) == exp( exclusive cumsum of log )  (MXU matmul)
    trans = jnp.exp(jnp.dot(jnp.log(1.0 - alpha + eps), tri_ref[...],
                            preferred_element_type=jnp.float32))
    weights = alpha * trans

    comp = jnp.sum(weights[..., None] * rgb, axis=-2)       # (TB, 3)
    acc = jnp.sum(weights, axis=-1, keepdims=True)          # (TB, 1)
    depth = jnp.sum(weights * t, axis=-1, keepdims=True)    # (TB, 1)
    if white_bkgd:
        comp = comp + (1.0 - acc)

    weights_ref[...] = weights
    # packed misc slab: cols 0:3 comp_rgb, col 3 acc, col 4 depth, rest zero
    misc_ref[...] = jnp.concatenate(
        [comp, acc, depth, jnp.zeros_like(t[:, :3])], axis=-1)


def volumetric_rendering_pallas(raw_rgb, raw_sigma, t_vals, dirs, white_bkgd,
                                tile_rays=128):
    # TODO(synk): a rays-on-lanes transposed layout would make these stores lane-dense;
    # left as-is since this kernel is <2% of total DMA after the MLP-output shrink.
    B, Ns, _ = raw_rgb.shape
    tb = min(tile_rays, _round_up(B, 8))
    bp = _round_up(B, tb)
    if bp != B:
        pad = bp - B
        raw_rgb = jnp.pad(raw_rgb, ((0, pad), (0, 0), (0, 0)))
        raw_sigma = jnp.pad(raw_sigma, ((0, pad), (0, 0)))
        t_vals = jnp.pad(t_vals, ((0, pad), (0, 0)))
        dirs = jnp.pad(dirs, ((0, pad), (0, 0)))

    tri = jnp.asarray(np.triu(np.ones((Ns, Ns), np.float32), k=1))    # k<j -> 1

    weights, misc = pl.pallas_call(
        functools.partial(_render_kernel, white_bkgd=white_bkgd),
        grid=(bp // tb,),
        in_specs=[
            pl.BlockSpec((tb, Ns, 3), lambda i: (i, 0, 0)),
            pl.BlockSpec((tb, Ns), lambda i: (i, 0)),
            pl.BlockSpec((tb, Ns), lambda i: (i, 0)),
            pl.BlockSpec((tb, 3), lambda i: (i, 0)),
            pl.BlockSpec((Ns, Ns), lambda i: (0, 0)),
        ],
        out_specs=[
            pl.BlockSpec((tb, Ns), lambda i: (i, 0)),
            pl.BlockSpec((tb, 8), lambda i: (i, 0)),
        ],
        out_shape=[jax.ShapeDtypeStruct((bp, Ns), jnp.float32),
                   jax.ShapeDtypeStruct((bp, 8), jnp.float32)],
        compiler_params=pltpu.CompilerParams(dimension_semantics=("parallel",)),
    )(raw_rgb, raw_sigma, t_vals, dirs, tri)

    comp = misc[:B, 0:3]
    acc = misc[:B, 3]
    depth = misc[:B, 4]
    return comp, acc, weights[:B], depth


# ----------------------------------------------------------------------------------
# Plain-JAX glue: positional encoding, sampling, camera transforms, synthetic encoder
# ----------------------------------------------------------------------------------
def pos_enc(x, min_deg, max_deg):
    scales = jnp.asarray([2.0 ** i for i in range(min_deg, max_deg)], jnp.float32)
    xb = (x[..., None, :] * scales[:, None]).reshape(x.shape[:-1] + (-1,))
    four = jnp.sin(jnp.concatenate([xb, xb + 0.5 * jnp.pi], axis=-1))
    return jnp.concatenate([x, four], axis=-1)


def sample_along_rays(rays_o, rays_d, num_samples, near, far, randomized, lindisp):
    bsz = rays_o.shape[0]
    t = jnp.linspace(0.0, 1.0, num_samples, dtype=jnp.float32)
    if lindisp:
        t_vals = 1.0 / (1.0 / near * (1.0 - t) + 1.0 / far * t)
    else:
        t_vals = near * (1.0 - t) + far * t
    # TODO(synk): randomized stratified sampling omitted (this script runs randomized=False).
    t_vals = jnp.broadcast_to(t_vals, (bsz, num_samples))
    coords = rays_o[..., None, :] + t_vals[..., None] * rays_d[..., None, :]
    return t_vals, coords


def piecewise_constant_pdf(bins, weights, num_samples):
    eps = 1e-5
    weight_sum = jnp.sum(weights, axis=-1, keepdims=True)
    padding = jnp.maximum(0.0, eps - weight_sum)
    weights = weights + padding / weights.shape[-1]
    weight_sum = weight_sum + padding
    pdf = weights / weight_sum
    cdf = jnp.minimum(1.0, jnp.cumsum(pdf[..., :-1], axis=-1))
    cdf = jnp.concatenate(
        [jnp.zeros_like(cdf[..., :1]), cdf, jnp.ones_like(cdf[..., :1])], axis=-1)

    u = jnp.arange(num_samples, dtype=jnp.float32) / num_samples   # deterministic
    u = jnp.broadcast_to(u, bins.shape[:-1] + (num_samples,))
    u = jnp.minimum(u, 1.0 - 1e-7)

    mask = u[..., None, :] >= cdf[..., :, None]

    def find_interval(x):
        x0 = jnp.max(jnp.where(mask, x[..., None], x[..., :1, None]), axis=-2)
        x1 = jnp.min(jnp.where(~mask, x[..., None], x[..., -1:, None]), axis=-2)
        return x0, x1

    bins_g0, bins_g1 = find_interval(bins)
    cdf_g0, cdf_g1 = find_interval(cdf)
    denom = cdf_g1 - cdf_g0
    tt = jnp.clip(jnp.where(denom < 1e-8, 0.0, (u - cdf_g0) / denom), 0.0, 1.0)
    return bins_g0 + tt * (bins_g1 - bins_g0)


def sample_pdf(bins, weights, origins, directions, t_vals, num_samples):
    t_samples = piecewise_constant_pdf(bins, weights, num_samples)
    t_vals = jnp.sort(jnp.concatenate([t_vals, t_samples], axis=-1), axis=-1)
    coords = origins[..., None, :] + t_vals[..., None] * directions[..., None, :]
    return t_vals, coords


def world2camera(xyz, poses, n_views):
    xyz = jnp.repeat(xyz, n_views, axis=0)               # (NV, Np, 3)
    rot = poses[:, None, :3, :3]
    xyz_rot = jnp.matmul(rot, xyz[..., None])[..., 0]
    return xyz_rot + poses[:, None, :3, 3]


def world2camera_viewdirs(vd, poses, n_views):
    vd = jnp.repeat(vd, n_views, axis=0)                 # (NV, B, 3)
    rot = poses[:, None, :3, :3]
    return jnp.matmul(rot, vd[..., None])[..., 0]


def projection(xyz_cam, focal, c):
    uv = -xyz_cam[..., :2] / xyz_cam[..., 2:3]
    return uv * focal + c


def encoder_index(features, uv, image_shape):
    # TODO(synk): pretrained ResNet34 SpatialEncoder replaced by a synthetic feature
    # volume; bilinear grid_sample-style indexing (a gather) is done in plain JAX.
    # Features are channel-last (NV, Hf, Wf, C) so the gather emits (NV, Np, C) directly
    # (no HBM transpose of the 512-d latent before the MLP kernel).
    NV, Hf, Wf, C = features.shape
    uv_norm = uv / image_shape * 2.0 - 1.0               # align_corners=True convention
    x = (uv_norm[..., 0] + 1.0) * 0.5 * (Wf - 1)
    y = (uv_norm[..., 1] + 1.0) * 0.5 * (Hf - 1)
    x0 = jnp.floor(x)
    y0 = jnp.floor(y)
    x1, y1 = x0 + 1, y0 + 1
    wx1, wy1 = x - x0, y - y0
    wx0, wy0 = 1.0 - wx1, 1.0 - wy1

    def gather(ix, iy):
        valid = ((ix >= 0) & (ix < Wf) & (iy >= 0) & (iy < Hf)).astype(features.dtype)
        ixc = jnp.clip(ix, 0, Wf - 1).astype(jnp.int32)
        iyc = jnp.clip(iy, 0, Hf - 1).astype(jnp.int32)
        vals = jax.vmap(lambda f, yy, xx: f[yy, xx, :])(features, iyc, ixc)  # (NV, Np, C)
        return vals * valid[..., None]

    out = (gather(x0, y0) * (wx0 * wy0)[..., None]
           + gather(x1, y0) * (wx1 * wy0)[..., None]
           + gather(x0, y1) * (wx0 * wy1)[..., None]
           + gather(x1, y1) * (wx1 * wy1)[..., None])
    return out                                            # (NV, Np, C)


# ----------------------------------------------------------------------------------
# Deterministic parameter init (xavier_uniform weights, torch-default biases) + packing
# ----------------------------------------------------------------------------------
def _linear_params(key, fan_in, fan_out):
    kw, kb = jax.random.split(key)
    bound = math.sqrt(6.0 / (fan_in + fan_out))
    w = jax.random.uniform(kw, (fan_in, fan_out), jnp.float32, -bound, bound)
    bb = 1.0 / math.sqrt(fan_in)
    b = jax.random.uniform(kb, (1, fan_out), jnp.float32, -bb, bb)
    return w, b


def init_nerf_mlp_params(key):
    pos_size = POS_ENC_DIM + LATENT_SIZE       # 575
    W = NETWIDTH
    keys = jax.random.split(key, 9)
    w0, b0 = _linear_params(keys[0], pos_size, W)
    w1, b1 = _linear_params(keys[1], W, W)
    w2, b2 = _linear_params(keys[2], W, W)
    w3, b3 = _linear_params(keys[3], W, W)
    wb, bb = _linear_params(keys[4], W, W)
    wd, bd = _linear_params(keys[5], W, 1)
    wv0, bv0 = _linear_params(keys[6], W + VIEW_ENC_DIM, W)
    wv1, bv1 = _linear_params(keys[7], W, W)
    wrgb, brgb = _linear_params(keys[8], W, 3)
    return {
        'w0p': w0[:POS_ENC_DIM], 'w0l': w0[POS_ENC_DIM:], 'b0': b0,
        'w1': w1, 'b1': b1, 'w2': w2, 'b2': b2, 'w3': w3, 'b3': b3,
        'wb': wb, 'bb': bb, 'wd': wd, 'bd': bd,
        'wv0b': wv0[:W], 'wv0v': wv0[W:], 'bv0': bv0,
        'wv1': wv1, 'bv1': bv1, 'wrgb': wrgb, 'brgb': brgb,
    }


def pack_mlp_params(p):
    """Consolidate the 20 weight/bias tensors into 7 kernel inputs (bf16 matmul weights)."""
    W = NETWIDTH
    w_stack = jnp.stack(
        [p['w1'], p['w2'], p['w3'], p['wb'], p['wv1']],
        axis=0).astype(jnp.bfloat16)                              # (5, 128, 128)
    # fused head: rows 0:128 act on h_avg (density -> lane 3), rows 128:256 act on hv
    # (rgb -> lanes 0:3); output is an 8-lane packed slab.
    w_head = jnp.zeros((2 * W, HEAD_DIM), jnp.float32)
    w_head = w_head.at[:W, 3:4].set(p['wd'])
    w_head = w_head.at[W:, 0:3].set(p['wrgb'])
    b_head = (jnp.zeros((1, W), jnp.float32)
              .at[0, 0:3].set(p['brgb'][0])
              .at[0, 3].set(p['bd'][0, 0]))
    b_stack = jnp.concatenate(
        [p['b0'], p['b1'], p['b2'], p['b3'], p['bb'], p['bv0'], p['bv1'], b_head],
        axis=0).astype(jnp.float32)                               # (8, 128)
    return {
        'w0p': p['w0p'].astype(jnp.bfloat16),
        'w0l': p['w0l'].astype(jnp.bfloat16),
        'wv0b': p['wv0b'].astype(jnp.bfloat16),
        'wv0v': p['wv0v'].astype(jnp.bfloat16),
        'w_stack': w_stack,
        'w_head': w_head.astype(jnp.bfloat16),
        'b_stack': b_stack,
    }


# ----------------------------------------------------------------------------------
# PixelNeRF forward
# ----------------------------------------------------------------------------------
def pixelnerf_forward(params, rays, randomized, white_bkgd, near, far,
                      *, num_levels=2, num_coarse_samples=8, num_fine_samples=8,
                      num_src_views=2, lindisp=False):
    del randomized  # deterministic path only (randomized=False)
    feats = params['encoder_features']              # synthetic encoder output (NHWC)
    image_shape = jnp.asarray(
        [rays['src_imgs'].shape[-1], rays['src_imgs'].shape[-2]], jnp.float32)
    NV = num_src_views

    packed = {'coarse': pack_mlp_params(params['coarse']),
              'fine': pack_mlp_params(params['fine'])}

    ret = []
    t_vals = None
    weights = None
    for i_level in range(num_levels):
        if i_level == 0:
            t_vals, samples = sample_along_rays(
                rays['rays_o'], rays['rays_d'], num_coarse_samples,
                near, far, False, lindisp)
            mlp_packed = packed['coarse']
        else:
            t_mids = 0.5 * (t_vals[..., 1:] + t_vals[..., :-1])
            t_vals, samples = sample_pdf(
                t_mids, weights[..., 1:-1], rays['rays_o'], rays['rays_d'],
                t_vals, num_fine_samples)
            mlp_packed = packed['fine']

        B, N_samples, _ = samples.shape
        samples_flat = samples.reshape(-1, 3)[None]                    # (1, B*Ns, 3)
        samples_cam = world2camera(samples_flat, rays['src_poses'], NV)

        focal = jnp.tile(rays['src_focal'][0][None, None], (1, 2))     # (1, 2)
        c = rays['src_c'][0][None]                                     # (1, 2)
        uv = projection(samples_cam, focal, c)                         # (NV, B*Ns, 2)

        latent = encoder_index(feats, uv, image_shape)                 # (NV, B*Ns, 512)

        samples_enc = pos_enc(samples_cam, MIN_DEG_POINT, MAX_DEG_POINT)  # (NV, B*Ns, 63)

        viewdirs_cam = world2camera_viewdirs(rays['viewdirs'][None],
                                             rays['src_poses'], NV)    # (NV, B, 3)
        viewdirs_enc = pos_enc(viewdirs_cam, 0, DEG_VIEW)              # (NV, B, 27)
        vdim = viewdirs_enc.shape[-1]
        cond_tile = jnp.tile(viewdirs_enc[:, None, :, :],
                             (1, 1, N_samples, 1)).reshape(-1, vdim)   # torch.tile semantics
        cond_tile = cond_tile.reshape(NV, B * N_samples, vdim)

        raw_rgb, raw_sigma = nerf_mlp_pallas(mlp_packed, samples_enc, cond_tile, latent)
        raw_rgb = raw_rgb.reshape(B, N_samples, -1)
        raw_sigma = raw_sigma.reshape(B, N_samples, -1)

        comp_rgb, acc, weights, depth = volumetric_rendering_pallas(
            raw_rgb, raw_sigma[..., 0], t_vals, rays['rays_d'], white_bkgd)
        ret.append((comp_rgb, acc, depth))
    return ret


# ----------------------------------------------------------------------------------
if __name__ == "__main__":
    key = jax.random.PRNGKey(0)
    k_rays, k_dirs, k_imgs, k_feat, k_coarse, k_fine = jax.random.split(key, 6)

    B = 4            # rays
    NV = 2           # source views
    H = W = 16       # source image resolution
    FEAT_HW = 8      # synthetic encoder feature-map resolution
    NUM_COARSE = 8
    NUM_FINE = 8
    near, far = 2.0, 6.0

    rays_o = 0.1 * jax.random.normal(k_rays, (B, 3), jnp.float32)
    d_xy = 0.1 * jax.random.normal(k_dirs, (B, 2), jnp.float32)
    rays_d = jnp.concatenate([d_xy, jnp.ones((B, 1), jnp.float32)], axis=-1)
    viewdirs = rays_d / jnp.linalg.norm(rays_d, axis=-1, keepdims=True)

    src_poses = jnp.tile(jnp.eye(4, dtype=jnp.float32)[None], (NV, 1, 1))
    src_poses = src_poses.at[:, 2, 3].set(1.0)            # z offset keeps camera z > 0
    rays = {
        'rays_o': rays_o,
        'rays_d': rays_d,
        'viewdirs': viewdirs,
        'src_imgs': jax.random.normal(k_imgs, (NV, 3, H, W), jnp.float32),
        'src_poses': src_poses,
        'src_focal': jnp.full((NV,), 20.0, jnp.float32),
        'src_c': jnp.full((NV, 2), 8.0, jnp.float32),
    }

    params = {
        'coarse': init_nerf_mlp_params(k_coarse),
        'fine': init_nerf_mlp_params(k_fine),
        # synthetic SpatialEncoder feature volume (channel-last NHWC), deterministic
        'encoder_features': 0.1 * jax.random.normal(
            k_feat, (NV, FEAT_HW, FEAT_HW, LATENT_SIZE), jnp.float32),
    }

    ret = pixelnerf_forward(params, rays, randomized=False, white_bkgd=False,
                            near=near, far=far,
                            num_levels=2, num_coarse_samples=NUM_COARSE,
                            num_fine_samples=NUM_FINE, num_src_views=NV)

    ret = jax.block_until_ready(ret)
    for lvl, (comp_rgb, acc, depth) in enumerate(ret):
        assert comp_rgb.shape == (B, 3) and acc.shape == (B,) and depth.shape == (B,)
        assert bool(jnp.all(jnp.isfinite(comp_rgb)))
        assert bool(jnp.all(jnp.isfinite(acc))) and bool(jnp.all(jnp.isfinite(depth)))
    print("KERNEL_OK")
</pallas_src>

<mosaic_0001>
module attributes {stable_mosaic.version = 11 : i64} {
  func.func @_nerf_mlp_kernel(%arg0: i32, %arg1: memref<2x32x63xbf16, #tpu.memory_space<vmem>>, %arg2: memref<2x32x512xbf16, #tpu.memory_space<vmem>>, %arg3: memref<2x32x27xbf16, #tpu.memory_space<vmem>>, %arg4: memref<63x128xbf16, #tpu.memory_space<vmem>>, %arg5: memref<512x128xbf16, #tpu.memory_space<vmem>>, %arg6: memref<128x128xbf16, #tpu.memory_space<vmem>>, %arg7: memref<27x128xbf16, #tpu.memory_space<vmem>>, %arg8: memref<5x128x128xbf16, #tpu.memory_space<vmem>>, %arg9: memref<256x8xbf16, #tpu.memory_space<vmem>>, %arg10: memref<8x128xf32, #tpu.memory_space<vmem>>, %arg11: memref<32x8xf32, #tpu.memory_space<vmem>>) attributes {dimension_semantics = [#tpu.dimension_semantics<parallel>], iteration_bounds = array<i64: 1>, scalar_prefetch = 0 : i64, scratch_operands = 0 : i64, tpu.core_type = #tpu.core_type<tc>, window_params = [{transform_indices = @transform_0, window_bounds = array<i64: 2, 32, 63>}, {transform_indices = @transform_1, window_bounds = array<i64: 2, 32, 512>}, {transform_indices = @transform_2, window_bounds = array<i64: 2, 32, 27>}, {pipeline_mode = #tpu.pipeline_mode<synchronous>, transform_indices = @transform_3, window_bounds = array<i64: 63, 128>}, {pipeline_mode = #tpu.pipeline_mode<synchronous>, transform_indices = @transform_4, window_bounds = array<i64: 512, 128>}, {pipeline_mode = #tpu.pipeline_mode<synchronous>, transform_indices = @transform_5, window_bounds = array<i64: 128, 128>}, {pipeline_mode = #tpu.pipeline_mode<synchronous>, transform_indices = @transform_6, window_bounds = array<i64: 27, 128>}, {pipeline_mode = #tpu.pipeline_mode<synchronous>, transform_indices = @transform_7, window_bounds = array<i64: 5, 128, 128>}, {pipeline_mode = #tpu.pipeline_mode<synchronous>, transform_indices = @transform_8, window_bounds = array<i64: 256, 8>}, {pipeline_mode = #tpu.pipeline_mode<synchronous>, transform_indices = @transform_9, window_bounds = array<i64: 8, 128>}, {transform_indices = @transform_10, window_bounds = array<i64: 32, 8>}]} {
    %c0 = arith.constant 0 : index
    %c0_0 = arith.constant 0 : index
    %0 = vector.load %arg10[%c0, %c0_0] : memref<8x128xf32, #tpu.memory_space<vmem>>, vector<8x128xf32>
    %c0_1 = arith.constant 0 : index
    %c0_2 = arith.constant 0 : index
    %c0_3 = arith.constant 0 : index
    %1 = vector.load %arg1[%c0_1, %c0_2, %c0_3] : memref<2x32x63xbf16, #tpu.memory_space<vmem>>, vector<2x32x63xbf16>
    %2 = vector.shape_cast %1 : vector<2x32x63xbf16> to vector<64x63xbf16>
    %c0_4 = arith.constant 0 : index
    %c0_5 = arith.constant 0 : index
    %c0_6 = arith.constant 0 : index
    %3 = vector.load %arg2[%c0_4, %c0_5, %c0_6] : memref<2x32x512xbf16, #tpu.memory_space<vmem>>, vector<2x32x512xbf16>
    %4 = vector.shape_cast %3 : vector<2x32x512xbf16> to vector<64x512xbf16>
    %c0_7 = arith.constant 0 : index
    %c0_8 = arith.constant 0 : index
    %c0_9 = arith.constant 0 : index
    %5 = vector.load %arg3[%c0_7, %c0_8, %c0_9] : memref<2x32x27xbf16, #tpu.memory_space<vmem>>, vector<2x32x27xbf16>
    %6 = vector.shape_cast %5 : vector<2x32x27xbf16> to vector<64x27xbf16>
    %c0_10 = arith.constant 0 : index
    %c0_11 = arith.constant 0 : index
    %7 = vector.load %arg4[%c0_10, %c0_11] : memref<63x128xbf16, #tpu.memory_space<vmem>>, vector<63x128xbf16>
    %cst = arith.constant dense<0.000000e+00> : vector<64x128xf32>
    %8 = tpu.matmul %2, %7, %cst {dimension_numbers = #tpu.dot_dimension_numbers<[1], [0], [0], [1], [0, 0, 1, 1], [], []>} : vector<64x63xbf16>, vector<63x128xbf16>, vector<64x128xf32> -> vector<64x128xf32>
    %c0_12 = arith.constant 0 : index
    %c0_13 = arith.constant 0 : index
    %9 = vector.load %arg5[%c0_12, %c0_13] : memref<512x128xbf16, #tpu.memory_space<vmem>>, vector<512x128xbf16>
    %cst_14 = arith.constant dense<0.000000e+00> : vector<64x128xf32>
    %10 = tpu.matmul %4, %9, %cst_14 {dimension_numbers = #tpu.dot_dimension_numbers<[1], [0], [0], [1], [0, 0, 1, 1], [], []>} : vector<64x512xbf16>, vector<512x128xbf16>, vector<64x128xf32> -> vector<64x128xf32>
    %11 = arith.addf %8, %10 : vector<64x128xf32>
    %12 = vector.extract_strided_slice %0 {offsets = [0, 0], sizes = [1, 128], strides = [1, 1]} : vector<8x128xf32> to vector<1x128xf32>
    %13 = vector.broadcast %12 : vector<1x128xf32> to vector<64x128xf32>
    %14 = arith.addf %11, %13 : vector<64x128xf32>
    %cst_15 = arith.constant 0.000000e+00 : f32
    %15 = vector.broadcast %cst_15 : f32 to vector<64x128xf32>
    %16 = arith.maximumf %14, %15 : vector<64x128xf32>
    %17 = arith.truncf %16 : vector<64x128xf32> to vector<64x128xbf16>
    %c0_16 = arith.constant 0 : index
    %c0_17 = arith.constant 0 : index
    %c0_18 = arith.constant 0 : index
    %18 = vector.load %arg8[%c0_16, %c0_17, %c0_18] : memref<5x128x128xbf16, #tpu.memory_space<vmem>>, vector<1x128x128xbf16>
    %19 = vector.shape_cast %18 : vector<1x128x128xbf16> to vector<128x128xbf16>
    %cst_19 = arith.constant dense<0.000000e+00> : vector<64x128xf32>
    %20 = tpu.matmul %17, %19, %cst_19 {dimension_numbers = #tpu.dot_dimension_numbers<[1], [0], [0], [1], [0, 0, 1, 1], [], []>} : vector<64x128xbf16>, vector<128x128xbf16>, vector<64x128xf32> -> vector<64x128xf32>
    %21 = vector.extract_strided_slice %0 {offsets = [1, 0], sizes = [1, 128], strides = [1, 1]} : vector<8x128xf32> to vector<1x128xf32>
    %22 = vector.broadcast %21 : vector<1x128xf32> to vector<64x128xf32>
    %23 = arith.addf %20, %22 : vector<64x128xf32>
    %cst_20 = arith.constant 0.000000e+00 : f32
    %24 = vector.broadcast %cst_20 : f32 to vector<64x128xf32>
    %25 = arith.maximumf %23, %24 : vector<64x128xf32>
    %26 = arith.truncf %25 : vector<64x128xf32> to vector<64x128xbf16>
    %c1 = arith.constant 1 : index
    %c0_21 = arith.constant 0 : index
    %c0_22 = arith.constant 0 : index
    %27 = vector.load %arg8[%c1, %c0_21, %c0_22] : memref<5x128x128xbf16, #tpu.memory_space<vmem>>, vector<1x128x128xbf16>
    %28 = vector.shape_cast %27 : vector<1x128x128xbf16> to vector<128x128xbf16>
    %cst_23 = arith.constant dense<0.000000e+00> : vector<64x128xf32>
    %29 = tpu.matmul %26, %28, %cst_23 {dimension_numbers = #tpu.dot_dimension_numbers<[1], [0], [0], [1], [0, 0, 1, 1], [], []>} : vector<64x128xbf16>, vector<128x128xbf16>, vector<64x128xf32> -> vector<64x128xf32>
    %30 = vector.extract_strided_slice %0 {offsets = [2, 0], sizes = [1, 128], strides = [1, 1]} : vector<8x128xf32> to vector<1x128xf32>
    %31 = vector.broadcast %30 : vector<1x128xf32> to vector<64x128xf32>
    %32 = arith.addf %29, %31 : vector<64x128xf32>
    %cst_24 = arith.constant 0.000000e+00 : f32
    %33 = vector.broadcast %cst_24 : f32 to vector<64x128xf32>
    %34 = arith.maximumf %32, %33 : vector<64x128xf32>
    %35 = arith.truncf %34 : vector<64x128xf32> to vector<64x128xbf16>
    %c2 = arith.constant 2 : index
    %c0_25 = arith.constant 0 : index
    %c0_26 = arith.constant 0 : index
    %36 = vector.load %arg8[%c2, %c0_25, %c0_26] : memref<5x128x128xbf16, #tpu.memory_space<vmem>>, vector<1x128x128xbf16>
    %37 = vector.shape_cast %36 : vector<1x128x128xbf16> to vector<128x128xbf16>
    %cst_27 = arith.constant dense<0.000000e+00> : vector<64x128xf32>
    %38 = tpu.matmul %35, %37, %cst_27 {dimension_numbers = #tpu.dot_dimension_numbers<[1], [0], [0], [1], [0, 0, 1, 1], [], []>} : vector<64x128xbf16>, vector<128x128xbf16>, vector<64x128xf32> -> vector<64x128xf32>
    %39 = vector.extract_strided_slice %0 {offsets = [3, 0], sizes = [1, 128], strides = [1, 1]} : vector<8x128xf32> to vector<1x128xf32>
    %40 = vector.broadcast %39 : vector<1x128xf32> to vector<64x128xf32>
    %41 = arith.addf %38, %40 : vector<64x128xf32>
    %cst_28 = arith.constant 0.000000e+00 : f32
    %42 = vector.broadcast %cst_28 : f32 to vector<64x128xf32>
    %43 = arith.maximumf %41, %42 : vector<64x128xf32>
    %44 = arith.truncf %43 : vector<64x128xf32> to vector<64x128xbf16>
    %c3 = arith.constant 3 : index
    %c0_29 = arith.constant 0 : index
    %c0_30 = arith.constant 0 : index
    %45 = vector.load %arg8[%c3, %c0_29, %c0_30] : memref<5x128x128xbf16, #tpu.memory_space<vmem>>, vector<1x128x128xbf16>
    %46 = vector.shape_cast %45 : vector<1x128x128xbf16> to vector<128x128xbf16>
    %cst_31 = arith.constant dense<0.000000e+00> : vector<64x128xf32>
    %47 = tpu.matmul %44, %46, %cst_31 {dimension_numbers = #tpu.dot_dimension_numbers<[1], [0], [0], [1], [0, 0, 1, 1], [], []>} : vector<64x128xbf16>, vector<128x128xbf16>, vector<64x128xf32> -> vector<64x128xf32>
    %48 = vector.extract_strided_slice %0 {offsets = [4, 0], sizes = [1, 128], strides = [1, 1]} : vector<8x128xf32> to vector<1x128xf32>
    %49 = vector.broadcast %48 : vector<1x128xf32> to vector<64x128xf32>
    %50 = arith.addf %47, %49 : vector<64x128xf32>
    %51 = arith.truncf %50 : vector<64x128xf32> to vector<64x128xbf16>
    %c0_32 = arith.constant 0 : index
    %c0_33 = arith.constant 0 : index
    %52 = vector.load %arg6[%c0_32, %c0_33] : memref<128x128xbf16, #tpu.memory_space<vmem>>, vector<128x128xbf16>
    %cst_34 = arith.constant dense<0.000000e+00> : vector<64x128xf32>
    %53 = tpu.matmul %51, %52, %cst_34 {dimension_numbers = #tpu.dot_dimension_numbers<[1], [0], [0], [1], [0, 0, 1, 1], [], []>} : vector<64x128xbf16>, vector<128x128xbf16>, vector<64x128xf32> -> vector<64x128xf32>
    %c0_35 = arith.constant 0 : index
    %c0_36 = arith.constant 0 : index
    %54 = vector.load %arg7[%c0_35, %c0_36] : memref<27x128xbf16, #tpu.memory_space<vmem>>, vector<27x128xbf16>
    %cst_37 = arith.constant dense<0.000000e+00> : vector<64x128xf32>
    %55 = tpu.matmul %6, %54, %cst_37 {dimension_numbers = #tpu.dot_dimension_numbers<[1], [0], [0], [1], [0, 0, 1, 1], [], []>} : vector<64x27xbf16>, vector<27x128xbf16>, vector<64x128xf32> -> vector<64x128xf32>
    %56 = arith.addf %53, %55 : vector<64x128xf32>
    %57 = vector.extract_strided_slice %0 {offsets = [5, 0], sizes = [1, 128], strides = [1, 1]} : vector<8x128xf32> to vector<1x128xf32>
    %58 = vector.broadcast %57 : vector<1x128xf32> to vector<64x128xf32>
    %59 = arith.addf %56, %58 : vector<64x128xf32>
    %60 = vector.extract_strided_slice %59 {offsets = [0, 0], sizes = [32, 128], strides = [1, 1]} : vector<64x128xf32> to vector<32x128xf32>
    %61 = vector.extract_strided_slice %59 {offsets = [32, 0], sizes = [32, 128], strides = [1, 1]} : vector<64x128xf32> to vector<32x128xf32>
    %62 = arith.addf %60, %61 : vector<32x128xf32>
    %cst_38 = arith.constant 5.000000e-01 : f32
    %63 = vector.broadcast %cst_38 : f32 to vector<32x128xf32>
    %64 = arith.mulf %62, %63 : vector<32x128xf32>
    %cst_39 = arith.constant 0.000000e+00 : f32
    %65 = vector.broadcast %cst_39 : f32 to vector<32x128xf32>
    %66 = arith.maximumf %64, %65 : vector<32x128xf32>
    %67 = arith.truncf %66 : vector<32x128xf32> to vector<32x128xbf16>
    %c4 = arith.constant 4 : index
    %c0_40 = arith.constant 0 : index
    %c0_41 = arith.constant 0 : index
    %68 = vector.load %arg8[%c4, %c0_40, %c0_41] : memref<5x128x128xbf16, #tpu.memory_space<vmem>>, vector<1x128x128xbf16>
    %69 = vector.shape_cast %68 : vector<1x128x128xbf16> to vector<128x128xbf16>
    %cst_42 = arith.constant dense<0.000000e+00> : vector<32x128xf32>
    %70 = tpu.matmul %67, %69, %cst_42 {dimension_numbers = #tpu.dot_dimension_numbers<[1], [0], [0], [1], [0, 0, 1, 1], [], []>} : vector<32x128xbf16>, vector<128x128xbf16>, vector<32x128xf32> -> vector<32x128xf32>
    %71 = vector.extract_strided_slice %0 {offsets = [6, 0], sizes = [1, 128], strides = [1, 1]} : vector<8x128xf32> to vector<1x128xf32>
    %72 = vector.broadcast %71 : vector<1x128xf32> to vector<32x128xf32>
    %73 = arith.addf %70, %72 : vector<32x128xf32>
    %cst_43 = arith.constant 0.000000e+00 : f32
    %74 = vector.broadcast %cst_43 : f32 to vector<32x128xf32>
    %75 = arith.maximumf %73, %74 : vector<32x128xf32>
    %76 = arith.truncf %75 : vector<32x128xf32> to vector<32x128xbf16>
    %77 = vector.extract_strided_slice %44 {offsets = [0, 0], sizes = [32, 128], strides = [1, 1]} : vector<64x128xbf16> to vector<32x128xbf16>
    %78 = arith.extf %77 : vector<32x128xbf16> to vector<32x128xf32>
    %79 = vector.extract_strided_slice %44 {offsets = [32, 0], sizes = [32, 128], strides = [1, 1]} : vector<64x128xbf16> to vector<32x128xbf16>
    %80 = arith.extf %79 : vector<32x128xbf16> to vector<32x128xf32>
    %81 = arith.addf %78, %80 : vector<32x128xf32>
    %cst_44 = arith.constant 5.000000e-01 : f32
    %82 = vector.broadcast %cst_44 : f32 to vector<32x128xf32>
    %83 = arith.mulf %81, %82 : vector<32x128xf32>
    %84 = arith.truncf %83 : vector<32x128xf32> to vector<32x128xbf16>
    %85 = tpu.concatenate %84, %76 in 1 : vector<32x128xbf16>, vector<32x128xbf16> -> vector<32x256xbf16>
    %c0_45 = arith.constant 0 : index
    %c0_46 = arith.constant 0 : index
    %86 = vector.load %arg9[%c0_45, %c0_46] : memref<256x8xbf16, #tpu.memory_space<vmem>>, vector<256x8xbf16>
    %cst_47 = arith.constant dense<0.000000e+00> : vector<32x8xf32>
    %87 = tpu.matmul %85, %86, %cst_47 {dimension_numbers = #tpu.dot_dimension_numbers<[1], [0], [0], [1], [0, 0, 1, 1], [], []>} : vector<32x256xbf16>, vector<256x8xbf16>, vector<32x8xf32> -> vector<32x8xf32>
    %88 = vector.extract_strided_slice %0 {offsets = [7, 0], sizes = [1, 8], strides = [1, 1]} : vector<8x128xf32> to vector<1x8xf32>
    %89 = vector.broadcast %88 : vector<1x8xf32> to vector<32x8xf32>
    %90 = arith.addf %87, %89 : vector<32x8xf32>
    %c0_48 = arith.constant 0 : index
    %c0_49 = arith.constant 0 : index
    %91 = vector.load %arg11[%c0_48, %c0_49] : memref<32x8xf32, #tpu.memory_space<vmem>>, vector<32x8xf32>
    tpu.vector_store %arg11[%c0_48, %c0_49], %90 {strides = array<i32>} : memref<32x8xf32, #tpu.memory_space<vmem>>, vector<32x8xf32>,
    return
  }
  func.func @transform_0(%arg0: i32) -> (i32, i32, i32) {
    %c0_i32 = arith.constant 0 : i32
    %c0_i32_0 = arith.constant 0 : i32
    %c0_i32_1 = arith.constant 0 : i32
    return %c0_i32, %arg0, %c0_i32_0 : i32, i32, i32
  }
  func.func @transform_1(%arg0: i32) -> (i32, i32, i32) {
    %c0_i32 = arith.constant 0 : i32
    %c0_i32_0 = arith.constant 0 : i32
    %c0_i32_1 = arith.constant 0 : i32
    return %c0_i32, %arg0, %c0_i32_0 : i32, i32, i32
  }
  func.func @transform_2(%arg0: i32) -> (i32, i32, i32) {
    %c0_i32 = arith.constant 0 : i32
    %c0_i32_0 = arith.constant 0 : i32
    %c0_i32_1 = arith.constant 0 : i32
    return %c0_i32, %arg0, %c0_i32_0 : i32, i32, i32
  }
  func.func @transform_3(%arg0: i32) -> (i32, i32) {
    %c0_i32 = arith.constant 0 : i32
    %c0_i32_0 = arith.constant 0 : i32
    %c0_i32_1 = arith.constant 0 : i32
    return %c0_i32, %c0_i32_0 : i32, i32
  }
  func.func @transform_4(%arg0: i32) -> (i32, i32) {
    %c0_i32 = arith.constant 0 : i32
    %c0_i32_0 = arith.constant 0 : i32
    %c0_i32_1 = arith.constant 0 : i32
    return %c0_i32, %c0_i32_0 : i32, i32
  }
  func.func @transform_5(%arg0: i32) -> (i32, i32) {
    %c0_i32 = arith.constant 0 : i32
    %c0_i32_0 = arith.constant 0 : i32
    %c0_i32_1 = arith.constant 0 : i32
    return %c0_i32, %c0_i32_0 : i32, i32
  }
  func.func @transform_6(%arg0: i32) -> (i32, i32) {
    %c0_i32 = arith.constant 0 : i32
    %c0_i32_0 = arith.constant 0 : i32
    %c0_i32_1 = arith.constant 0 : i32
    return %c0_i32, %c0_i32_0 : i32, i32
  }
  func.func @transform_7(%arg0: i32) -> (i32, i32, i32) {
    %c0_i32 = arith.constant 0 : i32
    %c0_i32_0 = arith.constant 0 : i32
    %c0_i32_1 = arith.constant 0 : i32
    %c0_i32_2 = arith.constant 0 : i32
    return %c0_i32, %c0_i32_0, %c0_i32_1 : i32, i32, i32
  }
  func.func @transform_8(%arg0: i32) -> (i32, i32) {
    %c0_i32 = arith.constant 0 : i32
    %c0_i32_0 = arith.constant 0 : i32
    %c0_i32_1 = arith.constant 0 : i32
    return %c0_i32, %c0_i32_0 : i32, i32
  }
  func.func @transform_9(%arg0: i32) -> (i32, i32) {
    %c0_i32 = arith.constant 0 : i32
    %c0_i32_0 = arith.constant 0 : i32
    %c0_i32_1 = arith.constant 0 : i32
    return %c0_i32, %c0_i32_0 : i32, i32
  }
  func.func @transform_10(%arg0: i32) -> (i32, i32) {
    %c0_i32 = arith.constant 0 : i32
    %c0_i32_0 = arith.constant 0 : i32
    return %arg0, %c0_i32 : i32, i32
  }
}

</mosaic_0001>

<bundles_post_ra>
// kernel: tpu_custom_call.1
= control target key start
LH: loop header
LB: loop body
LE: loop exit
PB: predicated region body
PF: predicated region fallthrough
CT: control target
= control target key end

     0   :  { %15 = vsyncpa [#allocation3], 0  ;;  %s2978_s0 = inlined_call_operand.hbm [shape: bf16[2,32,63], index: 0, kind: input, shape index: {}]   ;;  %s2979_s1 = inlined_call_operand.vmem [shape: bf16[2,32,512], index: 1, kind: input, shape index: {}]   ;;  %s2980_s2 = inlined_call_operand.vmem [shape: bf16[2,32,27], index: 2, kind: input, shape index: {}]   ;;  %s2981_s3 = inlined_call_operand.hbm [shape: bf16[63,128], index: 3, kind: input, shape index: {}]   ;;  %s2982_s4 = inlined_call_operand.hbm [shape: bf16[512,128], index: 4, kind: input, shape index: {}]   ;;  %s2983_s5 = inlined_call_operand.vmem [shape: bf16[128,128], index: 5, kind: input, shape index: {}]   ;;  %s2984_s6 = inlined_call_operand.hbm [shape: bf16[27,128], index: 6, kind: input, shape index: {}]   ;;  %s2985_s7 = inlined_call_operand.hbm [shape: bf16[5,128,128], index: 7, kind: input, shape index: {}]   ;;  %s2986_s8 = inlined_call_operand.vmem [shape: bf16[256,8], index: 8, kind: input, shape index: {}]   ;;  %s2987_s9 = inlined_call_operand.vmem [shape: f32[8,128], index: 9, kind: input, shape index: {}]   ;;  %s2988_s10 = inlined_call_operand.vmem [shape: f32[32,8], index: 10, kind: output, shape index: {}]  }
   0x1   :  { %16 = vsyncpa [#allocation5], 0 }
   0x2   :  { %17 = vsyncpa [#allocation8], 0  ;;  %s2690_s13 = smov [#allocation4]   ;;  %s2691_s15 = smov [#allocation7]  }
   0x3   :  { %s39_s14 = sshll.u32 %s2690_s13, 4  ;;  %s65_s16 = sshll.u32 %s2691_s15, 4  ;;  %s40_s14 = int_to_ptr.vmem [resolvable:$true] %s39_s14  ;;  %s66_s16 = int_to_ptr.vmem [resolvable:$true] %s65_s16 }
   0x4   :  { %s2592_s17 = scalar_lea.vmem %s40_s14, 512  ;;  %p2597_p1 = scmp.lt.s32.totalorder %s40_s14, %s40_s14 }
   0x5   :  { %p2593_p0 = scmp.ne.s32.totalorder %s40_s14, %s2592_s17  ;;  %p2598_p2 = scmp.lt.s32.totalorder %s2592_s17, %s2592_s17 }
   0x7   :  { %p2599_p3 = por %p2598_p2, %p2597_p1 }
   0x9   :  { %p2600_p4 = pnand %p2599_p3, %p2593_p0 }
   0xb   :  { %2603 = shalt.err (!%p2600_p4)
}
   0xc   :  { %s2692_s18 = smov 64   ;;  %s2693_s19 = smov 4  }
   0xd   :  { %45 = dma.hbm_to_vmem [thread:$0]  %s2981_s3, 512, %s40_s14, [#allocation5], %s2692_s18, %s2692_s18, %s2693_s19  }
   0xe   :  { %s2612_s22 = scalar_lea.vmem %s66_s16, 256  ;;  %p2617_p6 = scmp.lt.s32.totalorder %s66_s16, %s66_s16 }
   0xf   :  { %p2613_p5 = scmp.ne.s32.totalorder %s66_s16, %s2612_s22  ;;  %p2618_p7 = scmp.lt.s32.totalorder %s2612_s22, %s2612_s22 }
  0x11   :  { %p2619_p8 = por %p2618_p7, %p2617_p6 }
  0x13   :  { %p2620_p9 = pnand %p2619_p8, %p2613_p5 }
  0x15   :  { %2623 = shalt.err (!%p2620_p9)
}
  0x16   :  { %71 = dma.hbm_to_vmem [thread:$0]  %s2984_s6, 256, %s66_s16, [#allocation8], %s2692_s18, %s2692_s18, %s2693_s19  }
  0x17   :  { %s2694_s25 = smov [#allocation2]   ;;  %s2695_s27 = smov [#allocation6]  }
  0x18   :  { %s23_s26 = sshll.u32 %s2694_s25, 4  ;;  %s51_s28 = sshll.u32 %s2695_s27, 4  ;;  %s24_s26 = int_to_ptr.vmem [resolvable:$true] %s23_s26  ;;  %s52_s28 = int_to_ptr.vmem [resolvable:$true] %s51_s28 }
  0x19   :  { %s2632_s3 = scalar_lea.vmem %s24_s26, 512  ;;  %p2637_p11 = scmp.lt.s32.totalorder %s24_s26, %s24_s26 }
  0x1a   :  { %p2633_p10 = scmp.ne.s32.totalorder %s24_s26, %s2632_s3  ;;  %p2638_p12 = scmp.lt.s32.totalorder %s2632_s3, %s2632_s3 }
  0x1c   :  { %p2639_p13 = por %p2638_p12, %p2637_p11 }
  0x1e   :  { %p2640_p0 = pnand %p2639_p13, %p2633_p10 }
  0x20   :  { %2643 = shalt.err (!%p2640_p0)
}
  0x21   :  { %29 = dma.hbm_to_vmem [thread:$0]  %s2978_s0, 512, %s24_s26, [#allocation3], %s2692_s18, %s2692_s18, %s2693_s19  }
  0x22   :  { %s2652_s6 = scalar_lea.vmem %s52_s28, 4096  ;;  %p2657_p2 = scmp.lt.s32.totalorder %s52_s28, %s52_s28 }
  0x23   :  { %p2653_p1 = scmp.ne.s32.totalorder %s52_s28, %s2652_s6  ;;  %p2658_p3 = scmp.lt.s32.totalorder %s2652_s6, %s2652_s6 }
  0x25   :  { %p2659_p4 = por %p2658_p3, %p2657_p2 }
  0x27   :  { %p2660_p5 = pnand %p2659_p4, %p2653_p1 }
  0x29   :  { %2663 = shalt.err (!%p2660_p5)
}
  0x2a   :  { %57 = dma.hbm_to_vmem [thread:$0]  %s2982_s4, 4096, %s52_s28, [#allocation5], %s2692_s18, %s2692_s18, %s2693_s19  }
  0x2b   :  { %s2696_s13 = smov [#allocation9]  }
  0x2c   :  { %s77_s14 = sshll.u32 %s2696_s13, 4  ;;  %s78_s14 = int_to_ptr.vmem [resolvable:$true] %s77_s14 }
  0x2d   :  { %s2672_s15 = scalar_lea.vmem %s78_s14, 5120  ;;  %p2677_p7 = scmp.lt.s32.totalorder %s78_s14, %s78_s14 }
  0x2e   :  { %p2673_p6 = scmp.ne.s32.totalorder %s78_s14, %s2672_s15  ;;  %p2678_p8 = scmp.lt.s32.totalorder %s2672_s15, %s2672_s15 }
  0x30   :  { %p2679_p9 = por %p2678_p8, %p2677_p7 }
  0x32   :  { %p2680_p10 = pnand %p2679_p9, %p2673_p6 }
  0x34   :  { %2683 = shalt.err (!%p2680_p10)
}
  0x35   :  { %83 = dma.hbm_to_vmem [thread:$0]  %s2985_s7, 5120, %s78_s14, [#allocation8], %s2692_s18, %s2692_s18, %s2693_s19  }
  0x36   :  { %2684 = dma.done.wait [#allocation3], 512  }
  0x37   :  { %2685 = vsyncadd [#allocation3], 4294966784 }
  0x38   :  { %2686 = dma.done.wait [#allocation5], 4608  }
  0x39   :  { %2687 = vsyncadd [#allocation5], 4294962688 }
  0x3a   :  { %2688 = dma.done.wait [#allocation8], 5376  }
  0x3b   :  { %2689 = vsyncadd [#allocation8], 4294961920  ;;  %v2450_v0 = vld [vmem:[#allocation6 + $0x78] sm:$0xff]   ;;  %v2454_v4 = vld [vmem:[#allocation6 + $0x70] sm:$0xff]   ;;  %vm667_vm0 = vcmask 1046528   ;;  %vm668_vm1 = vcmask 1047552  }
  0x3c   :  { %v2451_v1 = vld [vmem:[#allocation6 + $0xf8] sm:$0xff]   ;;  %2082 = vmatprep.subr.bf16.mxu0 %v2450_v0  ;;  %v2455_v5 = vld [vmem:[#allocation6 + $0xf0] sm:$0xff]   ;;  %v2458_v8 = vld [vmem:[#allocation6 + $0x68] sm:$0xff]   ;;  %v2697_v31 = vmov 65535   ;;  %vm654_vm2 = vcmask 515072   ;;  %vm1402_vm3 = vcmask 1044480  }
  0x3d   :  { %v2452_v2 = vld [vmem:[#allocation6 + $0x38] sm:$0xff]   ;;  %2122 = vmatprep.subr.bf16.mxu1 %v2451_v1  ;;  %v2456_v6 = vld [vmem:[#allocation6 + $0x30] sm:$0xff]   ;;  %v2459_v9 = vld [vmem:[#allocation6 + $0xe8] sm:$0xff]   ;;  %v669_v32 = vsel %vm667_vm0, 4294967295, %v2697_v31  ;;  %vm1403_vm4 = vcmask 1045504   ;;  %vm1389_vm5 = vcmask 220160  }
  0x3e   :  { %v2453_v3 = vld [vmem:[#allocation6 + $0xb8] sm:$0xff]   ;;  %2083 = vmatpush3.bf16.msra.mxu0 %v2452_v2  ;;  %v2457_v7 = vld [vmem:[#allocation6 + $0xb0] sm:$0xff]   ;;  %v2460_v10 = vld [vmem:[#allocation6 + $0x28] sm:$0xff]   ;;  %v670_v36 = vsel %vm668_vm1, %v669_v32, 0  ;;  %vm1936_vm6 = vcmask 64512  }
  0x3f   :  { %2123 = vmatpush3.bf16.msra.mxu1 %v2453_v3  ;;  %2084 = vmatprep.subr.bf16.mxu0 %v2454_v4  ;;  %v2461_v11 = vld [vmem:[#allocation6 + $0xa8] sm:$0xff]   ;;  %v2462_v12 = vld [vmem:[#allocation6 + $0x60] sm:$0xff]   ;;  %v2466_v16 = vld [vmem:[#allocation6 + $0x58] sm:$0xff]  }
  0x40   :  { %2124 = vmatprep.subr.bf16.mxu1 %v2455_v5  ;;  %v2463_v13 = vld [vmem:[#allocation6 + $0xe0] sm:$0xff]   ;;  %v2467_v17 = vld [vmem:[#allocation6 + $0xd8] sm:$0xff]   ;;  %v2470_v20 = vld [vmem:[#allocation6 + $0x50] sm:$0xff]  }
  0x41   :  { %v2464_v14 = vld [vmem:[#allocation6 + $0x20] sm:$0xff]   ;;  %v2468_v18 = vld [vmem:[#allocation6 + $0x18] sm:$0xff]   ;;  %v2471_v21 = vld [vmem:[#allocation6 + $0xd0] sm:$0xff]  }
  0x42   :  { %2085 = vmatpush3.bf16.msra.mxu0 %v2456_v6  ;;  %v2465_v15 = vld [vmem:[#allocation6 + $0xa0] sm:$0xff]   ;;  %v2469_v19 = vld [vmem:[#allocation6 + $0x98] sm:$0xff]   ;;  %v2472_v22 = vld [vmem:[#allocation6 + $0x10] sm:$0xff]  }
  0x43   :  { %2125 = vmatpush3.bf16.msra.mxu1 %v2457_v7  ;;  %2086 = vmatprep.subr.bf16.mxu0 %v2458_v8  ;;  %v2473_v23 = vld [vmem:[#allocation6 + $0x90] sm:$0xff]   ;;  %v2474_v24 = vld [vmem:[#allocation6 + $0x48] sm:$0xff]   ;;  %v2478_v28 = vld [vmem:[#allocation6 + $0x40] sm:$0xff]  }
  0x44   :  { %2126 = vmatprep.subr.bf16.mxu1 %v2459_v9  ;;  %v2475_v25 = vld [vmem:[#allocation6 + $0xc8] sm:$0xff]   ;;  %v2479_v29 = vld [vmem:[#allocation6 + $0xc0] sm:$0xff]   ;;  %v2488_v39 = vld [vmem:[#allocation4 + $0x18] sm:$0xff]  }
  0x45   :  { %v2476_v26 = vld [vmem:[#allocation6 + $0x8] sm:$0xff]   ;;  %v2480_v30 = vld [vmem:[#allocation6] sm:$0xff]   ;;  %v672_v41 = vand.u32 %v2488_v39, %v670_v36  ;;  %v2495_v43 = vld [vmem:[#allocation4 + $0x10] sm:$0xff]  }
  0x46   :  { %2087 = vmatpush3.bf16.msra.mxu0 %v2460_v10  ;;  %v2477_v27 = vld [vmem:[#allocation6 + $0x88] sm:$0xff]   ;;  %v2481_v33 = vld [vmem:[#allocation6 + $0x80] sm:$0xff]   ;;  %v2512_v58 = vld [vmem:[#allocation2 + $0x10] sm:$0xff]  }
  0x47   :  { %2127 = vmatpush3.bf16.msra.mxu1 %v2461_v11  ;;  %2088 = vmatprep.subr.bf16.mxu0 %v2462_v12  ;;  %v2482_v34 = vld [vmem:[%s2979_s1] ss:$16 sps:$4 sm:$0xff]   ;;  %v2484_v35 = vld [vmem:[%s2979_s1 + $0x4] ss:$16 sps:$4 sm:$0xff]   ;;  %v2485_v37 = vld [vmem:[%s2979_s1 + $0x8] ss:$16 sps:$4 sm:$0xff]  }
  0x48   :  { %2128 = vmatprep.subr.bf16.mxu1 %v2463_v13  ;;  %v2487_v38 = vld [vmem:[%s2979_s1 + $0xc] ss:$16 sps:$4 sm:$0xff]   ;;  %513 = vmatprep.mubr.bf16.mxu0 %v2484_v35  ;;  %v2489_v40 = vld [vmem:[%s2979_s1 + $0x24] ss:$16 sps:$4 sm:$0xff]   ;;  %v2493_v44 = vld [vmem:[%s2979_s1 + $0x20] ss:$16 sps:$4 sm:$0xff]   ;;  %v739_v35 = vlaneseq }
  0x49   :  { %578 = vmatprep.mubr.bf16.mxu1 %v2487_v38  ;;  %v2491_v42 = vld [vmem:[%s2979_s1 + $0x2c] ss:$16 sps:$4 sm:$0xff]   ;;  %v2494_v45 = vld [vmem:[%s2979_s1 + $0x28] ss:$16 sps:$4 sm:$0xff]   ;;  %v2496_v46 = vld [vmem:[%s2979_s1 + $0x44] ss:$16 sps:$4 sm:$0xff]  }
  0x4a   :  { %2089 = vmatpush3.bf16.msra.mxu0 %v2464_v14  ;;  %v2498_v47 = vld [vmem:[%s2979_s1 + $0x4c] ss:$16 sps:$4 sm:$0xff]   ;;  %v2509_v49 = vld [vmem:[#allocation4] sm:$0xff]   ;;  %v2501_v51 = vld [vmem:[%s2979_s1 + $0x48] ss:$16 sps:$4 sm:$0xff]  }
  0x4b   :  { %2129 = vmatpush3.bf16.msra.mxu1 %v2465_v15  ;;  %2090 = vmatprep.subr.bf16.mxu0 %v2466_v16  ;;  %v2502_v48 = vld [vmem:[#allocation4 + $0x8] sm:$0xff]   ;;  %v2500_v50 = vld [vmem:[%s2979_s1 + $0x40] ss:$16 sps:$4 sm:$0xff]   ;;  %v2503_v52 = vld [vmem:[%s2979_s1 + $0x64] ss:$16 sps:$4 sm:$0xff]  }
  0x4c   :  { %2130 = vmatprep.subr.bf16.mxu1 %v2467_v17  ;;  %v2505_v53 = vld [vmem:[%s2979_s1 + $0x6c] ss:$16 sps:$4 sm:$0xff]   ;;  %v2507_v54 = vld [vmem:[%s2979_s1 + $0x60] ss:$16 sps:$4 sm:$0xff]   ;;  %v2508_v55 = vld [vmem:[%s2979_s1 + $0x68] ss:$16 sps:$4 sm:$0xff]  }
  0x4d   :  { %v2510_v56 = vld [vmem:[#allocation2] sm:$0xff]   ;;  %v2511_v57 = vld [vmem:[#allocation2 + $0x8] sm:$0xff]   ;;  %v2513_v59 = vld [vmem:[#allocation2 + $0x18] sm:$0xff]  }
  0x4e   :  { %2091 = vmatpush3.bf16.msra.mxu0 %v2468_v18  ;;  %v2514_v60 = vld [vmem:[#allocation9 + $0x38] sm:$0xff]   ;;  %v2515_v61 = vld [vmem:[#allocation9 + $0x30] sm:$0xff]   ;;  %v2516_v62 = vld [vmem:[#allocation9 + $0x28] sm:$0xff]  }
  0x4f   :  { %2131 = vmatpush3.bf16.msra.mxu1 %v2469_v19  ;;  %2092 = vmatprep.subr.bf16.mxu0 %v2470_v20  ;;  %v2517_v63 = vld [vmem:[#allocation9 + $0x20] sm:$0xff]   ;;  %v2518_v0 = vld [vmem:[#allocation9 + $0x18] sm:$0xff]   ;;  %v2519_v1 = vld [vmem:[#allocation9 + $0x10] sm:$0xff]  }
  0x50   :  { %2132 = vmatprep.subr.bf16.mxu1 %v2471_v21  ;;  %v2520_v2 = vld [vmem:[#allocation9 + $0x8] sm:$0xff]   ;;  %v2521_v3 = vld [vmem:[#allocation9] sm:$0xff]   ;;  %v2522_v4 = vld [vmem:[#allocation9 + $0x78] sm:$0xff]  }
  0x51   :  { %v2523_v5 = vld [vmem:[#allocation9 + $0x70] sm:$0xff]   ;;  %v2524_v6 = vld [vmem:[#allocation9 + $0x68] sm:$0xff]   ;;  %v2525_v7 = vld [vmem:[#allocation9 + $0x60] sm:$0xff]  }
  0x52   :  { %2093 = vmatpush3.bf16.msra.mxu0 %v2472_v22  ;;  %v2526_v8 = vld [vmem:[#allocation9 + $0x58] sm:$0xff]  }
  0x53   :  { %2133 = vmatpush3.bf16.msra.mxu1 %v2473_v23  ;;  %2094 = vmatprep.subr.bf16.mxu0 %v2474_v24 }
  0x54   :  { %2134 = vmatprep.subr.bf16.mxu1 %v2475_v25 }
  0x56   :  { %2095 = vmatpush3.bf16.msra.mxu0 %v2476_v26 }
  0x57   :  { %2135 = vmatpush3.bf16.msra.mxu1 %v2477_v27  ;;  %2096 = vmatprep.subr.bf16.mxu0 %v2478_v28 }
  0x58   :  { %2136 = vmatprep.subr.bf16.mxu1 %v2479_v29 }
  0x5a   :  { %2097 = vmatpush3.bf16.msra.mxu0 %v2480_v30 }
  0x5b   :  { %2137 = vmatpush3.bf16.msra.mxu1 %v2481_v33  ;;  %2274 = vmatprep.subr.bf16.mxu0 %v672_v41 }
  0x5c   :  { %2290 = vmatprep.subr.bf16.mxu1 %v2514_v60 }
  0x5d   :  { %514 = vmatmul.mubr.bf16.vlgmr.msra.gmra.mxu0 %v2482_v34 }
  0x5e   :  { %579 = vmatmul.mubr.bf16.vlgmr.msra.gmra.mxu1 %v2485_v37  ;;  %521 = vmatprep.mubr.bf16.mxu0 %v2489_v40  ;;  %v2836_v40 = vshrl.u32 %v739_v35, 7 }
  0x5f   :  { %586 = vmatprep.mubr.bf16.mxu1 %v2491_v42  ;;  %2275 = vmatpush3.bf16.msra.mxu0 %v672_v41 }
  0x60   :  { %2276 = vmatprep.subr.bf16.mxu0 %v2495_v43  ;;  %2291 = vmatpush3.bf16.msra.mxu1 %v2514_v60 }
  0x61   :  { %2292 = vmatprep.subr.bf16.mxu1 %v2515_v61 }
  0x63   :  { %2277 = vmatpush3.bf16.msra.mxu0 %v2495_v43 }
  0x64   :  { %2278 = vmatprep.subr.bf16.mxu0 %v2502_v48  ;;  %2293 = vmatpush3.bf16.msra.mxu1 %v2515_v61 }
  0x65   :  { %522 = vmatmul.mubr.bf16.gmra.mxu0 %v2493_v44  ;;  %2294 = vmatprep.subr.bf16.mxu1 %v2516_v62 }
  0x66   :  { %587 = vmatmul.mubr.bf16.gmra.mxu1 %v2494_v45  ;;  %529 = vmatprep.mubr.bf16.mxu0 %v2496_v46 }
  0x67   :  { %594 = vmatprep.mubr.bf16.mxu1 %v2498_v47  ;;  %2279 = vmatpush3.bf16.msra.mxu0 %v2502_v48 }
  0x68   :  { %2280 = vmatprep.subr.bf16.mxu0 %v2509_v49  ;;  %2295 = vmatpush3.bf16.msra.mxu1 %v2516_v62 }
  0x69   :  { %2296 = vmatprep.subr.bf16.mxu1 %v2517_v63 }
  0x6b   :  { %2281 = vmatpush3.bf16.msra.mxu0 %v2509_v49 }
  0x6c   :  { %2297 = vmatpush3.bf16.msra.mxu1 %v2517_v63  ;;  %2314 = vmatprep.subr.bf16.mxu0 %v2522_v4 }
  0x6d   :  { %530 = vmatmul.mubr.bf16.gmra.mxu0 %v2500_v50  ;;  %2298 = vmatprep.subr.bf16.mxu1 %v2518_v0  ;;  %v741_v50 = vsub.s32 0, %v2836_v40 }
  0x6e   :  { %595 = vmatmul.mubr.bf16.gmra.mxu1 %v2501_v51  ;;  %537 = vmatprep.mubr.bf16.mxu0 %v2503_v52 }
  0x6f   :  { %602 = vmatprep.mubr.bf16.mxu1 %v2505_v53  ;;  %v2842_v53 = vld [vmem:[%s2987_s9] sm:$0xff] }
  0x70   :  { %2299 = vmatpush3.bf16.msra.mxu1 %v2518_v0  ;;  %v742_v61 = vrot.slane %v2842_v53, %v741_v50  ;;  %v2532_v50 = vld [vmem:[#allocation9 + $0xa8] sm:$0xff]  }
  0x71   :  { %2300 = vmatprep.subr.bf16.mxu1 %v2519_v1 }
  0x74   :  { %2301 = vmatpush3.bf16.msra.mxu1 %v2519_v1 }
  0x75   :  { %538 = vmatmul.mubr.bf16.gmra.mxu0 %v2507_v54  ;;  %2302 = vmatprep.subr.bf16.mxu1 %v2520_v2 }
  0x76   :  { %603 = vmatmul.mubr.bf16.gmra.mxu1 %v2508_v55  ;;  %2282 = vmatprep.mubr.msk.bf16.mxu0 %vm654_vm2, %v2510_v56 }
  0x78   :  { %2303 = vmatpush3.bf16.msra.mxu1 %v2520_v2 }
  0x79   :  { %2304 = vmatprep.subr.bf16.mxu1 %v2521_v3 }
  0x7c   :  { %2305 = vmatpush3.bf16.msra.mxu1 %v2521_v3 }
  0x7d   :  { %2283 = vmatmul.mubr.msk.bf16.vlgmr.msra.gmra.mxu0 %vm654_vm2, %v2511_v57 }
  0x7e   :  { %2286 = vmatprep.mubr.msk.bf16.mxu0 %vm654_vm2, %v2512_v58  ;;  %2315 = vmatpush3.bf16.msra.mxu0 %v2522_v4 }
  0x7f   :  { %2316 = vmatprep.subr.bf16.mxu0 %v2523_v5 }
  0x82   :  { %2317 = vmatpush3.bf16.msra.mxu0 %v2523_v5 }
  0x83   :  { %2318 = vmatprep.subr.bf16.mxu0 %v2524_v6 }
  0x85   :  { %2287 = vmatmul.mubr.msk.bf16.gmra.mxu0 %vm654_vm2, %v2513_v59 }
  0x86   :  { %2319 = vmatpush3.bf16.msra.mxu0 %v2524_v6 }
  0x87   :  { %2320 = vmatprep.subr.bf16.mxu0 %v2525_v7 }
  0x8a   :  { %2321 = vmatpush3.bf16.msra.mxu0 %v2525_v7 }
  0x8b   :  { %2322 = vmatprep.subr.bf16.mxu0 %v2526_v8 }
  0x8e   :  { %2323 = vmatpush3.bf16.msra.mxu0 %v2526_v8 }
 0x11d   :  { %v2098_v9 = vpop.f32.mrf.mxu0 }
 0x11e   :  { %v2138_v10 = vpop.f32.mrf.mxu1 }
 0x11f   :  { %v2099_v11 = vpop.f32.mrf.mxu0 }
 0x120   :  { %v2139_v12 = vpop.f32.mrf.mxu1  ;;  %v2100_v41 = vadd.f32 %v2099_v11, %v2098_v9 }
 0x121   :  { %v2101_v13 = vpop.f32.mrf.mxu0  ;;  %v2140_v42 = vadd.f32 %v2139_v12, %v2138_v10 }
 0x122   :  { %v2141_v14 = vpop.f32.mrf.mxu1 }
 0x123   :  { %v2102_v15 = vpop.f32.mrf.mxu0  ;;  %v581_v54 = vadd.f32 %v2140_v42, %v2100_v41 }
 0x124   :  { %v2142_v16 = vpop.f32.mrf.mxu1  ;;  %v2103_v51 = vadd.f32 %v2102_v15, %v2101_v13 }
 0x125   :  { %v2104_v17 = vpop.f32.mrf.mxu0  ;;  %v2143_v52 = vadd.f32 %v2142_v16, %v2141_v14 }
 0x126   :  { %v2144_v18 = vpop.f32.mrf.mxu1 }
 0x127   :  { %v2105_v19 = vpop.f32.mrf.mxu0  ;;  %v584_v2 = vadd.f32 %v2143_v52, %v2103_v51  ;;  %v2533_v51 = vld [vmem:[#allocation9 + $0xa0] sm:$0xff]   ;;  %v2534_v52 = vld [vmem:[#allocation9 + $0x98] sm:$0xff]  }
 0x128   :  { %v2145_v20 = vpop.f32.mrf.mxu1  ;;  %v2106_v43 = vadd.f32 %v2105_v19, %v2104_v17 }
 0x129   :  { %v2107_v21 = vpop.f32.mrf.mxu0  ;;  %v2146_v44 = vadd.f32 %v2145_v20, %v2144_v18 }
 0x12a   :  { %v2147_v22 = vpop.f32.mrf.mxu1 }
 0x12b   :  { %v2108_v23 = vpop.f32.mrf.mxu0  ;;  %v589_v55 = vadd.f32 %v2146_v44, %v2106_v43 }
 0x12c   :  { %v2148_v24 = vpop.f32.mrf.mxu1  ;;  %v2109_v46 = vadd.f32 %v2108_v23, %v2107_v21 }
 0x12d   :  { %v2110_v25 = vpop.f32.mrf.mxu0  ;;  %v2149_v47 = vadd.f32 %v2148_v24, %v2147_v22 }
 0x12e   :  { %v2150_v26 = vpop.f32.mrf.mxu1 }
 0x12f   :  { %v2111_v27 = vpop.f32.mrf.mxu0  ;;  %v592_v58 = vadd.f32 %v2149_v47, %v2109_v46  ;;  %v2528_v46 = vld [vmem:[#allocation9 + $0x48] sm:$0xff]   ;;  %v2529_v47 = vld [vmem:[#allocation9 + $0x40] sm:$0xff]  }
 0x130   :  { %v2151_v28 = vpop.f32.mrf.mxu1  ;;  %v2112_v63 = vadd.f32 %v2111_v27, %v2110_v25 }
 0x131   :  { %v2113_v29 = vpop.f32.mrf.mxu0  ;;  %v2152_v0 = vadd.f32 %v2151_v28, %v2150_v26 }
 0x132   :  { %v2153_v30 = vpop.f32.mrf.mxu1 }
 0x133   :  { %v2114_v32 = vpop.f32.mrf.mxu0  ;;  %v597_v16 = vadd.f32 %v2152_v0, %v2112_v63 }
 0x134   :  { %v2154_v33 = vpop.f32.mrf.mxu1  ;;  %v2115_v13 = vadd.f32 %v2114_v32, %v2113_v29 }
 0x135   :  { %v2116_v34 = vpop.f32.mrf.mxu0  ;;  %v2155_v14 = vadd.f32 %v2154_v33, %v2153_v30 }
 0x136   :  { %v2156_v36 = vpop.f32.mrf.mxu1 }
 0x137   :  { %v2117_v37 = vpop.f32.mrf.mxu0  ;;  %v600_v28 = vadd.f32 %v2155_v14, %v2115_v13 }
 0x138   :  { %v2157_v38 = vpop.f32.mrf.mxu1  ;;  %v2118_v3 = vadd.f32 %v2117_v37, %v2116_v34 }
 0x139   :  { %v2119_v39 = vpop.f32.mrf.mxu0  ;;  %v2158_v4 = vadd.f32 %v2157_v38, %v2156_v36 }
 0x13a   :  { %v2159_v48 = vpop.f32.mrf.mxu1 }
 0x13b   :  { %v2120_v45 = vpop.f32.mrf.mxu0  ;;  %v605_v18 = vadd.f32 %v2158_v4, %v2118_v3 }
 0x13c   :  { %v2160_v59 = vpop.f32.mrf.mxu1  ;;  %v2121_v5 = vadd.f32 %v2120_v45, %v2119_v39  ;;  %v2527_v45 = vld [vmem:[#allocation9 + $0x50] sm:$0xff]  }
 0x13d   :  { %v2284_v49 = vpop.f32.mrf.mxu0  ;;  %v2161_v7 = vadd.f32 %v2160_v59, %v2159_v48  ;;  %2324 = vmatprep.subr.bf16.mxu0 %v2527_v45  ;;  %v2530_v48 = vld [vmem:[#allocation9 + $0xb8] sm:$0xff]  }
 0x13e   :  { %v717_v60 = vadd.f32 %v2284_v49, %v589_v55  ;;  %2325 = vmatpush3.bf16.msra.mxu0 %v2527_v45  ;;  %v2531_v49 = vld [vmem:[#allocation9 + $0xb0] sm:$0xff]   ;;  %2338 = vmatprep.subr.bf16.mxu1 %v2530_v48 }
 0x13f   :  { %v708_v56 = vpop.f32.mrf.mxu0  ;;  %v608_v23 = vadd.f32 %v2161_v7, %v2121_v5  ;;  %2326 = vmatprep.subr.bf16.mxu0 %v2528_v46 }
 0x140   :  { %v709_v57 = vadd.f32 %v708_v56, %v581_v54  ;;  %v745_v11 = vadd.f32 %v742_v61, %v717_v60  ;;  %v781_v54 = vsub.s32 1, %v2836_v40 }
 0x141   :  { %v2285_v62 = vpop.f32.mrf.mxu0 }
 0x142   :  { %v720_v1 = vadd.f32 %v2285_v62, %v592_v58  ;;  %v743_v8 = vadd.f32 %v742_v61, %v709_v57  ;;  %v753_v24 = vmax.f32 %v745_v11, 0.0  ;;  %2327 = vmatpush3.bf16.msra.mxu0 %v2528_v46  ;;  %v782_v56 = vrot.slane %v2842_v53, %v781_v54 }
 0x143   :  { %v711_v6 = vpop.f32.mrf.mxu0  ;;  %2328 = vmatprep.subr.bf16.mxu0 %v2529_v47 }
 0x144   :  { %v746_v9 = vadd.f32 %v742_v61, %v720_v1  ;;  %v712_v10 = vadd.f32 %v711_v6, %v584_v2  ;;  %v751_v20 = vmax.f32 %v743_v8, 0.0 }
 0x145   :  { %v2288_v12 = vpop.f32.mrf.mxu0 }
 0x146   :  { %v744_v15 = vadd.f32 %v742_v61, %v712_v10  ;;  %v754_v17 = vmax.f32 %v746_v9, 0.0  ;;  %v733_v25 = vadd.f32 %v2288_v12, %v605_v18  ;;  %2329 = vmatpush3.bf16.msra.mxu0 %v2529_v47 }
 0x147   :  { %v724_v19 = vpop.f32.mrf.mxu0 }
 0x148   :  { %v752_v21 = vmax.f32 %v744_v15, 0.0  ;;  %v725_v22 = vadd.f32 %v724_v19, %v597_v16  ;;  %v760_v35 = vpack.c.bf16 %v754_v17, %v753_v24  ;;  %v749_v32 = vadd.f32 %v742_v61, %v733_v25  ;;  %v2539_v24 = vld [vmem:[#allocation9 + $0xf0] sm:$0xff]   ;;  %v2540_v25 = vld [vmem:[#allocation9 + $0xe8] sm:$0xff]  }
 0x149   :  { %v2289_v26 = vpop.f32.mrf.mxu0 }
 0x14a   :  { %v736_v27 = vadd.f32 %v2289_v26, %v608_v23  ;;  %v759_v34 = vpack.c.bf16 %v752_v21, %v751_v20  ;;  %v747_v37 = vadd.f32 %v742_v61, %v725_v22  ;;  %v757_v42 = vmax.f32 %v749_v32, 0.0  ;;  %v2535_v20 = vld [vmem:[#allocation9 + $0x90] sm:$0xff]   ;;  %v2536_v21 = vld [vmem:[#allocation9 + $0x88] sm:$0xff]   ;;  %v2537_v22 = vld [vmem:[#allocation9 + $0x80] sm:$0xff]  }
 0x14b   :  { %v727_v36 = vpop.f32.mrf.mxu0  ;;  %v2538_v23 = vld [vmem:[#allocation9 + $0xf8] sm:$0xff]   ;;  %v2541_v26 = vld [vmem:[#allocation9 + $0xe0] sm:$0xff]  }
 0x14c   :  { %v750_v29 = vadd.f32 %v742_v61, %v736_v27  ;;  %v728_v30 = vadd.f32 %v727_v36, %v600_v28  ;;  %2306 = vmatprep.mubr.bf16.mxu1 %v759_v34  ;;  %v755_v39 = vmax.f32 %v747_v37, 0.0  ;;  %2362 = vmatprep.subr.bf16.mxu0 %v2538_v23  ;;  %v2542_v27 = vld [vmem:[#allocation9 + $0xd8] sm:$0xff]   ;;  %v927_v28 = vsub.s32 2, %v2836_v40 }
 0x14d   :  { %2307 = vmatmul.mubr.bf16.vlgmr.msra.gmra.mxu1 %v760_v35 }
 0x14e   :  { %v748_v33 = vadd.f32 %v742_v61, %v728_v30  ;;  %v758_v38 = vmax.f32 %v750_v29, 0.0  ;;  %2339 = vmatpush3.bf16.msra.mxu1 %v2530_v48  ;;  %v928_v35 = vrot.slane %v2842_v53, %v927_v28 }
 0x14f   :  { %2340 = vmatprep.subr.bf16.mxu1 %v2531_v49 }
 0x150   :  { %v756_v41 = vmax.f32 %v748_v33, 0.0  ;;  %v762_v44 = vpack.c.bf16 %v758_v38, %v757_v42 }
 0x152   :  { %v761_v43 = vpack.c.bf16 %v756_v41, %v755_v39  ;;  %2341 = vmatpush3.bf16.msra.mxu1 %v2531_v49 }
 0x153   :  { %2342 = vmatprep.subr.bf16.mxu1 %v2532_v50 }
 0x154   :  { %2310 = vmatprep.mubr.bf16.mxu1 %v761_v43 }
 0x155   :  { %2311 = vmatmul.mubr.bf16.gmra.mxu1 %v762_v44 }
 0x156   :  { %2343 = vmatpush3.bf16.msra.mxu1 %v2532_v50 }
 0x157   :  { %2344 = vmatprep.subr.bf16.mxu1 %v2533_v51 }
 0x15a   :  { %2345 = vmatpush3.bf16.msra.mxu1 %v2533_v51 }
 0x15b   :  { %2346 = vmatprep.subr.bf16.mxu1 %v2534_v52 }
 0x15e   :  { %2347 = vmatpush3.bf16.msra.mxu1 %v2534_v52 }
 0x15f   :  { %2348 = vmatprep.subr.bf16.mxu1 %v2535_v20 }
 0x162   :  { %2349 = vmatpush3.bf16.msra.mxu1 %v2535_v20 }
 0x163   :  { %2350 = vmatprep.subr.bf16.mxu1 %v2536_v21 }
 0x166   :  { %2351 = vmatpush3.bf16.msra.mxu1 %v2536_v21 }
 0x167   :  { %2352 = vmatprep.subr.bf16.mxu1 %v2537_v22 }
 0x16a   :  { %2353 = vmatpush3.bf16.msra.mxu1 %v2537_v22 }
 0x20d   :  { %v2308_v55 = vpop.f32.mrf.mxu1 }
 0x20e   :  { %v874_v61 = vadd.f32 %v2308_v55, %v782_v56 }
 0x20f   :  { %v865_v57 = vpop.f32.mrf.mxu1 }
 0x210   :  { %v866_v59 = vadd.f32 %v865_v57, %v782_v56  ;;  %v898_v4 = vmax.f32 %v874_v61, 0.0  ;;  %v2543_v61 = vld [vmem:[#allocation9 + $0xd0] sm:$0xff]  }
 0x211   :  { %v2309_v58 = vpop.f32.mrf.mxu1 }
 0x212   :  { %v877_v60 = vadd.f32 %v2309_v58, %v782_v56  ;;  %v896_v2 = vmax.f32 %v866_v59, 0.0 }
 0x213   :  { %v868_v62 = vpop.f32.mrf.mxu1 }
 0x214   :  { %v869_v63 = vadd.f32 %v868_v62, %v782_v56  ;;  %v899_v0 = vmax.f32 %v877_v60, 0.0  ;;  %v2544_v62 = vld [vmem:[#allocation9 + $0xc8] sm:$0xff]  }
 0x215   :  { %v2312_v1 = vpop.f32.mrf.mxu1 }
 0x216   :  { %v897_v3 = vmax.f32 %v869_v63, 0.0  ;;  %v905_v7 = vpack.c.bf16 %v899_v0, %v898_v4  ;;  %v890_v11 = vadd.f32 %v2312_v1, %v782_v56  ;;  %v2545_v63 = vld [vmem:[#allocation9 + $0xc0] sm:$0xff]   ;;  %v2546_v0 = vld [vmem:[%s2983_s5 + $0x38] sm:$0xff]  }
 0x217   :  { %v881_v5 = vpop.f32.mrf.mxu1  ;;  %v2547_v1 = vld [vmem:[%s2983_s5 + $0x30] sm:$0xff]   ;;  %2398 = vmatprep.subr.bf16.mxu1 %v2546_v0 }
 0x218   :  { %v904_v6 = vpack.c.bf16 %v897_v3, %v896_v2  ;;  %v882_v9 = vadd.f32 %v881_v5, %v782_v56  ;;  %v902_v17 = vmax.f32 %v890_v11, 0.0  ;;  %v2550_v2 = vld [vmem:[#allocation7 + $0x8] sm:$0x3f]   ;;  %v1404_v3 = vsel %vm1402_vm3, 4294967295, %v2697_v31  ;;  %v2551_v31 = vld [vmem:[%s2983_s5 + $0x18] sm:$0xff]  }
 0x219   :  { %v2313_v8 = vpop.f32.mrf.mxu1  ;;  %v1405_v4 = vsel %vm1403_vm4, %v1404_v3, 0  ;;  %v2560_v3 = vld [vmem:[#allocation9 + $0x138] sm:$0xff]  }
 0x21a   :  { %v893_v10 = vadd.f32 %v2313_v8, %v782_v56  ;;  %2330 = vmatprep.mubr.bf16.mxu0 %v904_v6  ;;  %v900_v15 = vmax.f32 %v882_v9, 0.0  ;;  %v1407_v5 = vand.u32 %v2550_v2, %v1405_v4  ;;  %v2548_v6 = vld [vmem:[%s2983_s5 + $0x28] sm:$0xff]   ;;  %v1073_v8 = vsub.s32 3, %v2836_v40  ;;  %v2559_v2 = vld [vmem:[%s2980_s2 + $0x18] sm:$0xff]  }
 0x21b   :  { %v884_v12 = vpop.f32.mrf.mxu1  ;;  %2331 = vmatmul.mubr.bf16.vlgmr.msra.gmra.mxu0 %v905_v7  ;;  %v2549_v7 = vld [vmem:[%s2983_s5 + $0x20] sm:$0xff]   ;;  %v1219_v4 = vsub.s32 4, %v2836_v40 }
 0x21c   :  { %v885_v13 = vadd.f32 %v884_v12, %v782_v56  ;;  %v903_v14 = vmax.f32 %v893_v10, 0.0  ;;  %2363 = vmatpush3.bf16.msra.mxu0 %v2538_v23  ;;  %v1074_v10 = vrot.slane %v2842_v53, %v1073_v8 }
 0x21d   :  { %2364 = vmatprep.subr.bf16.mxu0 %v2539_v24 }
 0x21e   :  { %v901_v16 = vmax.f32 %v885_v13, 0.0  ;;  %v907_v19 = vpack.c.bf16 %v903_v14, %v902_v17 }
 0x220   :  { %v906_v18 = vpack.c.bf16 %v901_v16, %v900_v15  ;;  %2365 = vmatpush3.bf16.msra.mxu0 %v2539_v24 }
 0x221   :  { %2366 = vmatprep.subr.bf16.mxu0 %v2540_v25 }
 0x222   :  { %2334 = vmatprep.mubr.bf16.mxu0 %v906_v18 }
 0x223   :  { %2335 = vmatmul.mubr.bf16.gmra.mxu0 %v907_v19 }
 0x224   :  { %2367 = vmatpush3.bf16.msra.mxu0 %v2540_v25 }
 0x225   :  { %2368 = vmatprep.subr.bf16.mxu0 %v2541_v26 }
 0x228   :  { %2369 = vmatpush3.bf16.msra.mxu0 %v2541_v26 }
 0x229   :  { %2370 = vmatprep.subr.bf16.mxu0 %v2542_v27 }
 0x22c   :  { %2371 = vmatpush3.bf16.msra.mxu0 %v2542_v27 }
 0x22d   :  { %2372 = vmatprep.subr.bf16.mxu0 %v2543_v61 }
 0x230   :  { %2373 = vmatpush3.bf16.msra.mxu0 %v2543_v61  ;;  %v2554_v61 = vld [vmem:[%s2983_s5 + $0x8] sm:$0xff]  }
 0x231   :  { %2374 = vmatprep.subr.bf16.mxu0 %v2544_v62 }
 0x234   :  { %2375 = vmatpush3.bf16.msra.mxu0 %v2544_v62  ;;  %v2555_v62 = vld [vmem:[%s2980_s2] sm:$0xff]  }
 0x235   :  { %2376 = vmatprep.subr.bf16.mxu0 %v2545_v63 }
 0x238   :  { %2377 = vmatpush3.bf16.msra.mxu0 %v2545_v63  ;;  %v2556_v63 = vld [vmem:[%s2980_s2 + $0x8] sm:$0xff]  }
 0x239   :  { %2386 = vmatprep.subr.bf16.mxu0 %v1407_v5 }
 0x2db   :  { %v2332_v34 = vpop.f32.mrf.mxu0 }
 0x2dc   :  { %v1020_v32 = vadd.f32 %v2332_v34, %v928_v35 }
 0x2dd   :  { %v1011_v36 = vpop.f32.mrf.mxu0 }
 0x2de   :  { %v1012_v29 = vadd.f32 %v1011_v36, %v928_v35  ;;  %v1044_v44 = vmax.f32 %v1020_v32, 0.0 }
 0x2df   :  { %v2333_v37 = vpop.f32.mrf.mxu0 }
 0x2e0   :  { %v1023_v30 = vadd.f32 %v2333_v37, %v928_v35  ;;  %v1042_v42 = vmax.f32 %v1012_v29, 0.0 }
 0x2e1   :  { %v1014_v33 = vpop.f32.mrf.mxu0 }
 0x2e2   :  { %v1015_v38 = vadd.f32 %v1014_v33, %v928_v35  ;;  %v1045_v39 = vmax.f32 %v1023_v30, 0.0 }
 0x2e3   :  { %v2336_v41 = vpop.f32.mrf.mxu0 }
 0x2e4   :  { %v1043_v43 = vmax.f32 %v1015_v38, 0.0  ;;  %v1051_v47 = vpack.c.bf16 %v1045_v39, %v1044_v44  ;;  %v1036_v51 = vadd.f32 %v2336_v41, %v928_v35 }
 0x2e5   :  { %v1027_v45 = vpop.f32.mrf.mxu0 }
 0x2e6   :  { %v1050_v46 = vpack.c.bf16 %v1043_v43, %v1042_v42  ;;  %v1028_v49 = vadd.f32 %v1027_v45, %v928_v35  ;;  %v1048_v58 = vmax.f32 %v1036_v51, 0.0 }
 0x2e7   :  { %v2337_v48 = vpop.f32.mrf.mxu0 }
 0x2e8   :  { %v1039_v50 = vadd.f32 %v2337_v48, %v928_v35  ;;  %2354 = vmatprep.mubr.bf16.mxu1 %v1050_v46  ;;  %v1046_v56 = vmax.f32 %v1028_v49, 0.0 }
 0x2e9   :  { %v1030_v52 = vpop.f32.mrf.mxu0  ;;  %2355 = vmatmul.mubr.bf16.vlgmr.msra.gmra.mxu1 %v1051_v47 }
 0x2ea   :  { %v1031_v54 = vadd.f32 %v1030_v52, %v928_v35  ;;  %v1049_v55 = vmax.f32 %v1039_v50, 0.0  ;;  %2399 = vmatpush3.bf16.msra.mxu1 %v2546_v0  ;;  %v2557_v0 = vld [vmem:[%s2983_s5] sm:$0xff]  }
 0x2eb   :  { %2400 = vmatprep.subr.bf16.mxu1 %v2547_v1 }
 0x2ec   :  { %v1047_v57 = vmax.f32 %v1031_v54, 0.0  ;;  %v1053_v60 = vpack.c.bf16 %v1049_v55, %v1048_v58 }
 0x2ee   :  { %v1052_v59 = vpack.c.bf16 %v1047_v57, %v1046_v56  ;;  %2401 = vmatpush3.bf16.msra.mxu1 %v2547_v1  ;;  %v2558_v1 = vld [vmem:[%s2980_s2 + $0x10] sm:$0xff]  }
 0x2ef   :  { %2402 = vmatprep.subr.bf16.mxu1 %v2548_v6 }
 0x2f0   :  { %2358 = vmatprep.mubr.bf16.mxu1 %v1052_v59  ;;  %v2552_v59 = vld [vmem:[%s2983_s5 + $0x10] sm:$0xff]  }
 0x2f1   :  { %2359 = vmatmul.mubr.bf16.gmra.mxu1 %v1053_v60  ;;  %v2553_v60 = vld [vmem:[#allocation7] sm:$0xff]  }
 0x2f2   :  { %2403 = vmatpush3.bf16.msra.mxu1 %v2548_v6 }
 0x2f3   :  { %2404 = vmatprep.subr.bf16.mxu1 %v2549_v7 }
 0x2f6   :  { %2405 = vmatpush3.bf16.msra.mxu1 %v2549_v7  ;;  %v1220_v7 = vrot.slane %v2842_v53, %v1219_v4 }
 0x2f7   :  { %2406 = vmatprep.subr.bf16.mxu1 %v2551_v31 }
 0x2fa   :  { %2407 = vmatpush3.bf16.msra.mxu1 %v2551_v31 }
 0x2fb   :  { %2408 = vmatprep.subr.bf16.mxu1 %v2552_v59 }
 0x2fe   :  { %2409 = vmatpush3.bf16.msra.mxu1 %v2552_v59  ;;  %v1589_v59 = vsub.s32 5, %v2836_v40 }
 0x2ff   :  { %2410 = vmatprep.subr.bf16.mxu1 %v2554_v61 }
 0x302   :  { %2411 = vmatpush3.bf16.msra.mxu1 %v2554_v61 }
 0x303   :  { %2412 = vmatprep.subr.bf16.mxu1 %v2557_v0 }
 0x306   :  { %2413 = vmatpush3.bf16.msra.mxu1 %v2557_v0 }
 0x3a9   :  { %v2356_v9 = vpop.f32.mrf.mxu1 }
 0x3aa   :  { %v1166_v15 = vadd.f32 %v2356_v9, %v1074_v10 }
 0x3ab   :  { %v1157_v11 = vpop.f32.mrf.mxu1 }
 0x3ac   :  { %v1158_v13 = vadd.f32 %v1157_v11, %v1074_v10  ;;  %v1190_v22 = vmax.f32 %v1166_v15, 0.0 }
 0x3ad   :  { %v2357_v12 = vpop.f32.mrf.mxu1 }
 0x3ae   :  { %v1169_v14 = vadd.f32 %v2357_v12, %v1074_v10  ;;  %v1188_v20 = vmax.f32 %v1158_v13, 0.0 }
 0x3af   :  { %v1160_v16 = vpop.f32.mrf.mxu1 }
 0x3b0   :  { %v1161_v17 = vadd.f32 %v1160_v16, %v1074_v10  ;;  %v1191_v18 = vmax.f32 %v1169_v14, 0.0 }
 0x3b1   :  { %v2360_v19 = vpop.f32.mrf.mxu1 }
 0x3b2   :  { %v1189_v21 = vmax.f32 %v1161_v17, 0.0  ;;  %v1182_v25 = vadd.f32 %v2360_v19, %v1074_v10  ;;  %v1197_v26 = vpack.c.bf16 %v1191_v18, %v1190_v22 }
 0x3b3   :  { %v1173_v23 = vpop.f32.mrf.mxu1 }
 0x3b4   :  { %v1196_v24 = vpack.c.bf16 %v1189_v21, %v1188_v20  ;;  %v1174_v28 = vadd.f32 %v1173_v23, %v1074_v10  ;;  %v1194_v36 = vmax.f32 %v1182_v25, 0.0  ;;  %v1739_v38 = vunpack.c.l.bf16 %v1197_v26  ;;  %v2561_v25 = vld [vmem:[#allocation9 + $0x130] sm:$0xff]  }
 0x3b5   :  { %v2361_v27 = vpop.f32.mrf.mxu1  ;;  %v1740_v39 = vunpack.c.h.bf16 %v1197_v26 }
 0x3b6   :  { %v1185_v34 = vadd.f32 %v2361_v27, %v1074_v10  ;;  %2378 = vmatprep.mubr.bf16.mxu0 %v1196_v24  ;;  %v1192_v30 = vmax.f32 %v1174_v28, 0.0  ;;  %v1737_v44 = vunpack.c.l.bf16 %v1196_v24  ;;  %v1738_v45 = vunpack.c.h.bf16 %v1196_v24  ;;  %v2563_v27 = vld [vmem:[#allocation9 + $0x120] sm:$0xff]   ;;  %v2564_v28 = vld [vmem:[#allocation9 + $0x118] sm:$0xff]  }
 0x3b7   :  { %v1176_v35 = vpop.f32.mrf.mxu1  ;;  %2379 = vmatmul.mubr.bf16.vlgmr.msra.gmra.mxu0 %v1197_v26  ;;  %v2562_v26 = vld [vmem:[#allocation9 + $0x128] sm:$0xff]  }
 0x3b8   :  { %v1195_v37 = vmax.f32 %v1185_v34, 0.0  ;;  %v1177_v29 = vadd.f32 %v1176_v35, %v1074_v10  ;;  %2387 = vmatpush3.bf16.msra.mxu0 %v1407_v5  ;;  %v2565_v34 = vld [vmem:[#allocation9 + $0x110] sm:$0xff]   ;;  %v2566_v35 = vld [vmem:[#allocation9 + $0x108] sm:$0xff]  }
 0x3b9   :  { %2388 = vmatprep.subr.bf16.mxu0 %v2553_v60 }
 0x3ba   :  { %v1199_v32 = vpack.c.bf16 %v1195_v37, %v1194_v36  ;;  %v1193_v33 = vmax.f32 %v1177_v29, 0.0  ;;  %v2567_v36 = vld [vmem:[#allocation9 + $0x100] sm:$0xff]   ;;  %v2568_v37 = vld [vmem:[%s2986_s8 + $0x78] sm:$0xff]  }
 0x3bb   :  { %v2569_v29 = vld [vmem:[%s2986_s8 + $0x38] sm:$0xff]   ;;  %2246 = vmatprep.subr.bf16.mxu1 %v2568_v37 }
 0x3bc   :  { %v1743_v41 = vunpack.c.l.bf16 %v1199_v32  ;;  %v1744_v42 = vunpack.c.h.bf16 %v1199_v32  ;;  %v1198_v43 = vpack.c.bf16 %v1193_v33, %v1192_v30  ;;  %2389 = vmatpush3.bf16.msra.mxu0 %v2553_v60  ;;  %v2570_v30 = vld [vmem:[%s2986_s8 + $0x70] sm:$0xff]   ;;  %v2572_v33 = vld [vmem:[%s2986_s8 + $0x68] sm:$0xff]  }
 0x3bd   :  { %2422 = vmatprep.subr.bf16.mxu0 %v2560_v3 }
 0x3be   :  { %v1741_v46 = vunpack.c.l.bf16 %v1198_v43  ;;  %v1742_v47 = vunpack.c.h.bf16 %v1198_v43  ;;  %2382 = vmatprep.mubr.bf16.mxu0 %v1198_v43  ;;  %v1747_v48 = vadd.f32 %v1743_v41, %v1739_v38  ;;  %v1748_v49 = vadd.f32 %v1744_v42, %v1740_v39  ;;  %v2573_v38 = vld [vmem:[%s2986_s8 + $0x28] sm:$0xff]   ;;  %v2574_v39 = vld [vmem:[%s2986_s8 + $0x60] sm:$0xff]   ;;  %v2576_v42 = vld [vmem:[%s2986_s8 + $0x58] sm:$0xff]  }
 0x3bf   :  { %2383 = vmatmul.mubr.bf16.gmra.mxu0 %v1199_v32  ;;  %v2571_v32 = vld [vmem:[%s2986_s8 + $0x30] sm:$0xff]   ;;  %v2575_v41 = vld [vmem:[%s2986_s8 + $0x20] sm:$0xff]   ;;  %v2577_v43 = vld [vmem:[%s2986_s8 + $0x18] sm:$0xff]  }
 0x3c0   :  { %v1745_v50 = vadd.f32 %v1741_v46, %v1737_v44  ;;  %v1746_v51 = vadd.f32 %v1742_v47, %v1738_v45  ;;  %v2867_v52 = vmul.f32 0.5, %v1747_v48  ;;  %v2869_v54 = vmul.f32 0.5, %v1748_v49  ;;  %2390 = vmatprep.mubr.msk.bf16.mxu0 %vm1389_vm5, %v2555_v62 }
 0x3c2   :  { %v2871_v55 = vmul.f32 0.5, %v1745_v50  ;;  %v2873_v56 = vmul.f32 0.5, %v1746_v51  ;;  %v1754_v57 = vpack.c.bf16 %v2869_v54, %v2867_v52 }
 0x3c4   :  { %v1753_v58 = vpack.c.bf16 %v2873_v56, %v2871_v55 }
 0x3c7   :  { %2391 = vmatmul.mubr.msk.bf16.vlgmr.msra.gmra.mxu0 %vm1389_vm5, %v2556_v63 }
 0x3c8   :  { %2394 = vmatprep.mubr.msk.bf16.mxu0 %vm1389_vm5, %v2558_v1  ;;  %2423 = vmatpush3.bf16.msra.mxu0 %v2560_v3 }
 0x3c9   :  { %2424 = vmatprep.subr.bf16.mxu0 %v2561_v25 }
 0x3cc   :  { %2425 = vmatpush3.bf16.msra.mxu0 %v2561_v25 }
 0x3cd   :  { %2426 = vmatprep.subr.bf16.mxu0 %v2562_v26 }
 0x3cf   :  { %2395 = vmatmul.mubr.msk.bf16.gmra.mxu0 %vm1389_vm5, %v2559_v2  ;;  %v1590_v2 = vrot.slane %v2842_v53, %v1589_v59 }
 0x3d0   :  { %2427 = vmatpush3.bf16.msra.mxu0 %v2562_v26 }
 0x3d1   :  { %2428 = vmatprep.subr.bf16.mxu0 %v2563_v27 }
 0x3d4   :  { %2429 = vmatpush3.bf16.msra.mxu0 %v2563_v27 }
 0x3d5   :  { %2430 = vmatprep.subr.bf16.mxu0 %v2564_v28 }
 0x3d8   :  { %2431 = vmatpush3.bf16.msra.mxu0 %v2564_v28 }
 0x3d9   :  { %2432 = vmatprep.subr.bf16.mxu0 %v2565_v34 }
 0x3dc   :  { %2433 = vmatpush3.bf16.msra.mxu0 %v2565_v34 }
 0x3dd   :  { %2434 = vmatprep.subr.bf16.mxu0 %v2566_v35 }
 0x3e0   :  { %2435 = vmatpush3.bf16.msra.mxu0 %v2566_v35 }
 0x3e1   :  { %2436 = vmatprep.subr.bf16.mxu0 %v2567_v36 }
 0x3e4   :  { %2437 = vmatpush3.bf16.msra.mxu0 %v2567_v36 }
 0x477   :  { %v2380_v5 = vpop.f32.mrf.mxu0 }
 0x478   :  { %v1312_v12 = vadd.f32 %v2380_v5, %v1220_v7 }
 0x479   :  { %v1303_v6 = vpop.f32.mrf.mxu0 }
 0x47a   :  { %v1304_v10 = vadd.f32 %v1303_v6, %v1220_v7 }
 0x47b   :  { %v2381_v31 = vpop.f32.mrf.mxu0 }
 0x47c   :  { %v1315_v8 = vadd.f32 %v2381_v31, %v1220_v7 }
 0x47d   :  { %v1306_v9 = vpop.f32.mrf.mxu0 }
 0x47e   :  { %v1307_v11 = vadd.f32 %v1306_v9, %v1220_v7  ;;  %v1335_v15 = vpack.c.bf16 %v1315_v8, %v1312_v12 }
 0x47f   :  { %v2384_v13 = vpop.f32.mrf.mxu0 }
 0x480   :  { %v1334_v14 = vpack.c.bf16 %v1307_v11, %v1304_v10  ;;  %v1328_v22 = vadd.f32 %v2384_v13, %v1220_v7 }
 0x481   :  { %v1319_v16 = vpop.f32.mrf.mxu0 }
 0x482   :  { %2414 = vmatprep.mubr.bf16.mxu1 %v1334_v14  ;;  %v1320_v20 = vadd.f32 %v1319_v16, %v1220_v7 }
 0x483   :  { %v2385_v17 = vpop.f32.mrf.mxu0  ;;  %2415 = vmatmul.mubr.bf16.vlgmr.msra.gmra.mxu1 %v1335_v15 }
 0x484   :  { %v1331_v18 = vadd.f32 %v2385_v17, %v1220_v7  ;;  %2247 = vmatpush3.bf16.msra.mxu1 %v2569_v29 }
 0x485   :  { %v1322_v19 = vpop.f32.mrf.mxu0  ;;  %2248 = vmatprep.subr.bf16.mxu1 %v2570_v30  ;;  %v2578_v30 = vld [vmem:[%s2986_s8 + $0x50] sm:$0xff]  }
 0x486   :  { %v1323_v21 = vadd.f32 %v1322_v19, %v1220_v7  ;;  %v1337_v24 = vpack.c.bf16 %v1331_v18, %v1328_v22 }
 0x487   :  { %v2392_v44 = vpop.f32.mrf.mxu0 }
 0x488   :  { %v1336_v23 = vpack.c.bf16 %v1323_v21, %v1320_v20  ;;  %2249 = vmatpush3.bf16.msra.mxu1 %v2571_v32  ;;  %v2579_v32 = vld [vmem:[%s2986_s8 + $0x10] sm:$0xff]  }
 0x489   :  { %2250 = vmatprep.subr.bf16.mxu1 %v2572_v33  ;;  %v1443_v45 = vpop.f32.mrf.mxu0  ;;  %v2580_v33 = vld [vmem:[%s2986_s8 + $0x48] sm:$0xff]  }
 0x48a   :  { %2418 = vmatprep.mubr.bf16.mxu1 %v1336_v23 }
 0x48b   :  { %2419 = vmatmul.mubr.bf16.gmra.mxu1 %v1337_v24  ;;  %v2393_v46 = vpop.f32.mrf.mxu0 }
 0x48c   :  { %2251 = vmatpush3.bf16.msra.mxu1 %v2573_v38  ;;  %v2581_v38 = vld [vmem:[%s2986_s8 + $0x8] sm:$0xff]  }
 0x48d   :  { %2252 = vmatprep.subr.bf16.mxu1 %v2574_v39  ;;  %v1446_v47 = vpop.f32.mrf.mxu0  ;;  %v2582_v39 = vld [vmem:[%s2986_s8 + $0x40] sm:$0xff]  }
 0x48f   :  { %v2396_v50 = vpop.f32.mrf.mxu0 }
 0x490   :  { %2253 = vmatpush3.bf16.msra.mxu1 %v2575_v41  ;;  %v2583_v41 = vld [vmem:[%s2986_s8] sm:$0xff]  }
 0x491   :  { %2254 = vmatprep.subr.bf16.mxu1 %v2576_v42  ;;  %v1459_v60 = vpop.f32.mrf.mxu0  ;;  %v1632_v42 = vsub.s32 6, %v2836_v40 }
 0x493   :  { %v2397_v3 = vpop.f32.mrf.mxu0 }
 0x494   :  { %2255 = vmatpush3.bf16.msra.mxu1 %v2577_v43 }
 0x495   :  { %v1462_v13 = vpop.f32.mrf.mxu0  ;;  %2256 = vmatprep.subr.bf16.mxu1 %v2578_v30 }
 0x498   :  { %2257 = vmatpush3.bf16.msra.mxu1 %v2579_v32 }
 0x499   :  { %2258 = vmatprep.subr.bf16.mxu1 %v2580_v33 }
 0x49c   :  { %2259 = vmatpush3.bf16.msra.mxu1 %v2581_v38 }
 0x49d   :  { %2260 = vmatprep.subr.bf16.mxu1 %v2582_v39 }
 0x4a0   :  { %2261 = vmatpush3.bf16.msra.mxu1 %v2583_v41 }
 0x543   :  { %v2416_v48 = vpop.f32.mrf.mxu1 }
 0x544   :  { %v1565_v1 = vadd.f32 %v2416_v48, %v2392_v44 }
 0x545   :  { %v1556_v49 = vpop.f32.mrf.mxu1 }
 0x546   :  { %v1557_v63 = vadd.f32 %v1556_v49, %v1443_v45  ;;  %v1593_v12 = vadd.f32 %v1590_v2, %v1565_v1  ;;  %v1633_v45 = vrot.slane %v2842_v53, %v1632_v42  ;;  %v1789_v1 = vsub.s32 7, %v2836_v40 }
 0x547   :  { %v2417_v51 = vpop.f32.mrf.mxu1 }
 0x548   :  { %v1568_v5 = vadd.f32 %v2417_v51, %v2393_v46  ;;  %v1591_v8 = vadd.f32 %v1590_v2, %v1557_v63 }
 0x549   :  { %v1559_v61 = vpop.f32.mrf.mxu1 }
 0x54a   :  { %v1560_v9 = vadd.f32 %v1559_v61, %v1446_v47  ;;  %v1594_v15 = vadd.f32 %v1590_v2, %v1568_v5 }
 0x54b   :  { %v2420_v62 = vpop.f32.mrf.mxu1 }
 0x54c   :  { %v1581_v0 = vadd.f32 %v2420_v62, %v2396_v50  ;;  %v1592_v20 = vadd.f32 %v1590_v2, %v1560_v9 }
 0x54d   :  { %v1572_v4 = vpop.f32.mrf.mxu1 }
 0x54e   :  { %v1573_v6 = vadd.f32 %v1572_v4, %v1459_v60  ;;  %v1597_v7 = vadd.f32 %v1590_v2, %v1581_v0 }
 0x54f   :  { %v2421_v31 = vpop.f32.mrf.mxu1 }
 0x550   :  { %v1595_v10 = vadd.f32 %v1590_v2, %v1573_v6  ;;  %v1584_v11 = vadd.f32 %v2421_v31, %v2397_v3  ;;  %v1601_v19 = vadd.f32 %v1597_v7, %v1593_v12  ;;  %v1790_v3 = vrot.slane %v2842_v53, %v1789_v1 }
 0x551   :  { %v1575_v14 = vpop.f32.mrf.mxu1 }
 0x552   :  { %v1599_v16 = vadd.f32 %v1595_v10, %v1591_v8  ;;  %v1598_v17 = vadd.f32 %v1590_v2, %v1584_v11  ;;  %v1576_v18 = vadd.f32 %v1575_v14, %v1462_v13  ;;  %v1605_v26 = vmul.f32 0.5, %v1601_v19 }
 0x554   :  { %v1602_v21 = vadd.f32 %v1598_v17, %v1594_v15  ;;  %v1596_v22 = vadd.f32 %v1590_v2, %v1576_v18  ;;  %v1603_v23 = vmul.f32 0.5, %v1599_v16  ;;  %v1609_v36 = vmax.f32 %v1605_v26, 0.0 }
 0x556   :  { %v1606_v24 = vmul.f32 0.5, %v1602_v21  ;;  %v1600_v25 = vadd.f32 %v1596_v22, %v1592_v20  ;;  %v1607_v34 = vmax.f32 %v1603_v23, 0.0 }
 0x558   :  { %v1604_v27 = vmul.f32 0.5, %v1600_v25  ;;  %v1610_v28 = vmax.f32 %v1606_v24, 0.0 }
 0x55a   :  { %v1608_v35 = vmax.f32 %v1604_v27, 0.0  ;;  %v1612_v29 = vpack.c.bf16 %v1610_v28, %v1609_v36 }
 0x55c   :  { %v1611_v37 = vpack.c.bf16 %v1608_v35, %v1607_v34 }
 0x55e   :  { %2438 = vmatprep.mubr.bf16.mxu0 %v1611_v37 }
 0x55f   :  { %2439 = vmatmul.mubr.bf16.vlgmr.msra.gmra.mxu0 %v1612_v29 }
 0x61f   :  { %v2440_v43 = vpop.f32.mrf.mxu0 }
 0x620   :  { %v1725_v50 = vadd.f32 %v2440_v43, %v1633_v45 }
 0x621   :  { %v1716_v44 = vpop.f32.mrf.mxu0 }
 0x622   :  { %v1717_v47 = vadd.f32 %v1716_v44, %v1633_v45  ;;  %v1733_v62 = vmax.f32 %v1725_v50, 0.0 }
 0x623   :  { %v2441_v46 = vpop.f32.mrf.mxu0 }
 0x624   :  { %v1728_v48 = vadd.f32 %v2441_v46, %v1633_v45  ;;  %v1731_v59 = vmax.f32 %v1717_v47, 0.0 }
 0x625   :  { %v1719_v49 = vpop.f32.mrf.mxu0 }
 0x626   :  { %v1720_v51 = vadd.f32 %v1719_v49, %v1633_v45  ;;  %v1734_v60 = vmax.f32 %v1728_v48, 0.0 }
 0x628   :  { %v1732_v61 = vmax.f32 %v1720_v51, 0.0  ;;  %v1736_v0 = vpack.c.bf16 %v1734_v60, %v1733_v62 }
 0x62a   :  { %v1735_v63 = vpack.c.bf16 %v1732_v61, %v1731_v59 }
 0x62c   :  { %1919 = vmatprep.mubr.bf16.mxu1 %v1735_v63 }
 0x62d   :  { %1920 = vmatmul.mubr.bf16.vlgmr.msra.gmra.mxu1 %v1753_v58 }
 0x62e   :  { %1927 = vmatprep.mubr.bf16.mxu1 %v1736_v0 }
 0x635   :  { %1928 = vmatmul.mubr.bf16.gmra.mxu1 %v1754_v57 }
 0x6ed   :  { %v2262_v2 = vpop.f32.mrf.mxu1 }
 0x6ef   :  { %v2263_v4 = vpop.f32.mrf.mxu1 }
 0x6f0   :  { %v2264_v5 = vadd.f32 %v2263_v4, %v2262_v2 }
 0x6f1   :  { %v2265_v6 = vpop.f32.mrf.mxu1 }
 0x6f2   :  { %v1922_v7 = vadd.f32 %v2264_v5, %v1790_v3 }
 0x6f3   :  { %v2266_v31 = vpop.f32.mrf.mxu1 }
 0x6f4   :  { %1937 = vst.msk [vmem:[%s2988_s10] sm:$0xff] %vm1936_vm6, %v1922_v7  ;;  %v2267_v55 = vadd.f32 %v2266_v31, %v2265_v6 }
 0x6f5   :  { %v2268_v56 = vpop.f32.mrf.mxu1 }
 0x6f6   :  { %v1925_v52 = vadd.f32 %v2267_v55, %v1790_v3 }
 0x6f7   :  { %v2269_v54 = vpop.f32.mrf.mxu1 }
 0x6f8   :  { %1938 = vst.msk [vmem:[%s2988_s10 + $0x8] sm:$0xff] %vm1936_vm6, %v1925_v52  ;;  %v2270_v40 = vadd.f32 %v2269_v54, %v2268_v56 }
 0x6f9   :  { %v2271_v53 = vpop.f32.mrf.mxu1 }
 0x6fa   :  { %v1930_v57 = vadd.f32 %v2270_v40, %v1790_v3 }
 0x6fb   :  { %v2272_v58 = vpop.f32.mrf.mxu1 }
 0x6fc   :  { %1939 = vst.msk [vmem:[%s2988_s10 + $0x10] sm:$0xff] %vm1936_vm6, %v1930_v57  ;;  %v2273_v8 = vadd.f32 %v2272_v58, %v2271_v53 }
 0x6fe   :  { %v1933_v9 = vadd.f32 %v2273_v8, %v1790_v3 }
 0x700   :  { %1940 = vst.msk [vmem:[%s2988_s10 + $0x18] sm:$0xff] %vm1936_vm6, %v1933_v9 }
 0x701   :  { %1945 = vsyncpa [#allocation3], 1 }
 0x702   :  { %1946 = vsyncpa [#allocation5], 1 }
 0x703   :  { %1947 = vsyncpa [#allocation8], 1 }

</bundles_post_ra>
